<compile_context>
chip_gen: v6e
topology: v6e:2x2x1
jax: 0.10.0
libtpu: 0.0.40
codegen_flags: <defaults>
</compile_context>

<pallas_src>
import functools

import jax
import jax.numpy as jnp
from jax.experimental import pallas as pl
from jax.experimental.pallas import tpu as pltpu

LANE = 128


def _round_up(x, m):
    return (x + m - 1) // m * m


def _pad2(x, rows, cols, dtype):
    buf = jnp.zeros((rows, cols), dtype)
    return buf.at[: x.shape[0], : x.shape[1]].set(x.astype(dtype))


def _fused_sage_kernel(*refs, num_layers):
    # refs = [h0, (adj_l, w_self_l, w_neigh_l, b_l) * L, out_ref, h_scratch_0..L-2]
    n_in = 1 + 4 * num_layers
    h_in_ref = refs[0]
    layer_refs = [refs[1 + 4 * l: 1 + 4 * (l + 1)] for l in range(num_layers)]
    out_ref = refs[n_in]
    scratch = refs[n_in + 1:]

    cur = h_in_ref  # ref holding the current layer's source-node features (bf16)
    for l in range(num_layers):
        adj_ref, ws_ref, wn_ref, b_ref = layer_refs[l]
        nd_p = adj_ref.shape[0]

        # mean neighbor aggregation on the MXU (bf16 x bf16 -> f32 accumulate)
        h_src = cur[...]
        h_neigh = jnp.dot(adj_ref[...], h_src, preferred_element_type=jnp.float32)

        # self features of dst nodes: first nd_p src rows, read as a ref window
        h_self = cur[pl.ds(0, nd_p), :]

        out = (jnp.dot(h_self, ws_ref[...], preferred_element_type=jnp.float32)
               + jnp.dot(h_neigh.astype(jnp.bfloat16), wn_ref[...],
                         preferred_element_type=jnp.float32)
               + b_ref[...])

        if l != num_layers - 1:
            out = jnp.maximum(out, 0.0)               # ReLU; dropout = eval identity
            scratch[l][...] = out.astype(jnp.bfloat16)  # intermediate stays in VMEM
            cur = scratch[l]
        else:
            out_ref[...] = out.astype(out_ref.dtype)


def fused_sage_forward(adjs, h0, padded_params, fp):
    """adjs          : list of (n_dst_l, n_src_l) row-normalized dense adjacencies (f32)
       h0            : (n_src0, f_in) node features (f32)
       padded_params : list of (w_self (fp,fp) bf16, w_neigh (fp,fp) bf16, b (1,fp) f32)
       fp            : lane-dense padded feature width (multiple of 128/256)
    """
    num_layers = len(adjs)
    assert num_layers == len(padded_params)
    n_src = [a.shape[1] for a in adjs]
    n_dst = [a.shape[0] for a in adjs]
    # DGL MFG convention: src nodes of layer l+1 are the dst nodes of layer l.
    for l in range(num_layers - 1):
        assert n_src[l + 1] == n_dst[l]
    ns_p = [_round_up(n, LANE) for n in n_src]
    nd_p = [_round_up(n, LANE) for n in n_dst]

    # --- lane/sublane-dense zero padding of per-call data (adjacency + features) ---
    h0_p = _pad2(h0, ns_p[0], fp, jnp.bfloat16)
    flat_args = [h0_p]
    for l, adj in enumerate(adjs):
        flat_args.append(_pad2(adj, nd_p[l], ns_p[l], jnp.bfloat16))
        flat_args.extend(padded_params[l])  # pre-padded in __init__, no per-call work

    kernel = functools.partial(_fused_sage_kernel, num_layers=num_layers)

    # advisory cost estimate (agg matmul + 2 projections per layer)
    flops, bytes_accessed = 0, 0
    for l in range(num_layers):
        flops += 2 * nd_p[l] * ns_p[l] * fp + 2 * 2 * nd_p[l] * fp * fp
        bytes_accessed += nd_p[l] * ns_p[l] * 2 + 2 * fp * fp * 2 + fp * 4
    bytes_accessed += int(h0_p.size) * 2 + nd_p[-1] * fp * 4

    # explicit VMEM budget (single-buffered: inputs + output + bf16 scratch)
    resident = sum(int(a.size) * a.dtype.itemsize for a in flat_args)
    resident += nd_p[-1] * fp * 4
    resident += sum(nd_p[l] * fp * 2 for l in range(num_layers - 1))
    vmem_limit = min(max(4 * resident, 16 << 20), 32 << 20)

    vspec = pl.BlockSpec(memory_space=pltpu.MemorySpace.VMEM)

    # Single fused, fully VMEM-resident call (toy sizes). For large graphs this becomes
    # a (dst-tiles x src-tiles) grid with an f32 accumulator and a "parallel" dst axis.
    out_p = pl.pallas_call(
        kernel,
        out_shape=jax.ShapeDtypeStruct((nd_p[-1], fp), jnp.float32),
        in_specs=[vspec] * len(flat_args),
        out_specs=vspec,
        scratch_shapes=[pltpu.VMEM((nd_p[l], fp), jnp.bfloat16)
                        for l in range(num_layers - 1)],
        compiler_params=pltpu.CompilerParams(vmem_limit_bytes=int(vmem_limit)),
        cost_estimate=pl.CostEstimate(flops=flops, transcendentals=0,
                                      bytes_accessed=bytes_accessed),
    )(*flat_args)

    return out_p


class DGLSAGEModelPallas:
    """Mirror of DGLSAGEModel: SAGEConv('mean') x num_layers, ReLU (+eval dropout) between."""

    def __init__(self, in_size, hid_size, out_size, num_layers, key):
        dims = [(in_size, hid_size)]
        dims += [(hid_size, hid_size) for _ in range(num_layers - 2)]
        dims += [(hid_size, out_size)]
        max_f = max(in_size, hid_size, out_size)
        # 128-multiple features on small models (v5e sweet spot); 256 once the hidden
        # dim exceeds 128 so the 2x256x256 MXUs of v6e/v7x are filled.
        self.fp = _round_up(max_f, 256 if max_f > LANE else LANE)
        self.out_size = out_size
        self.params = []          # original f32 params (reference / training)
        self.padded_params = []   # one-time lane-dense bf16/f32 padded params
        for (fi, fo) in dims:
            key, k1, k2, k3 = jax.random.split(key, 4)
            scale = 1.0 / jnp.sqrt(jnp.float32(fi))
            w_self = jax.random.uniform(k1, (fi, fo), jnp.float32, -scale, scale)
            w_neigh = jax.random.uniform(k2, (fi, fo), jnp.float32, -scale, scale)
            b = jax.random.uniform(k3, (1, fo), jnp.float32, -scale, scale)
            self.params.append((w_self, w_neigh, b))
            self.padded_params.append((
                _pad2(w_self, self.fp, self.fp, jnp.bfloat16),
                _pad2(w_neigh, self.fp, self.fp, jnp.bfloat16),
                _pad2(b, 1, self.fp, jnp.float32),
            ))

    def forward(self, blocks, h):
        n_dst_last = blocks[-1].shape[0]
        out_p = fused_sage_forward(blocks, h, self.padded_params, self.fp)
        return out_p[:n_dst_last, :self.out_size]


def make_blocks(key, node_counts, fanout=4):
    """Dense row-normalized adjacencies for each sampled bipartite block."""
    blocks = []
    for l in range(len(node_counts) - 1):
        n_src, n_dst = node_counts[l], node_counts[l + 1]
        key, k = jax.random.split(key)
        nbrs = jax.random.randint(k, (n_dst, fanout), 0, n_src)
        a = jnp.sum(jax.nn.one_hot(nbrs, n_src, dtype=jnp.float32), axis=1)
        deg = jnp.maximum(a.sum(axis=-1, keepdims=True), 1.0)
        blocks.append(a / deg)  # mean aggregation
    return blocks


def _ref_forward(blocks, h, params):
    """Pure-JAX f32 reference of the same math (guards fusion/padding/bf16)."""
    n_layers = len(params)
    for l, (adj, (w_self, w_neigh, b)) in enumerate(zip(blocks, params)):
        nd = adj.shape[0]
        h_neigh = adj @ h
        h = h[:nd] @ w_self + h_neigh @ w_neigh + b
        if l != n_layers - 1:
            h = jnp.maximum(h, 0.0)
    return h


if __name__ == "__main__":
    key = jax.random.PRNGKey(0)
    k_model, k_graph, k_feat = jax.random.split(key, 3)

    in_size, hid_size, out_size, num_layers = 16, 32, 8, 3
    # src nodes of layer0 -> dst0 (= src1) -> dst1 (= src2) -> dst2
    node_counts = [64, 32, 16, 8]

    model = DGLSAGEModelPallas(in_size, hid_size, out_size, num_layers, k_model)
    blocks = make_blocks(k_graph, node_counts)
    h0 = jax.random.normal(k_feat, (node_counts[0], in_size), jnp.float32)

    out = model.forward(blocks, h0)
    out = jax.block_until_ready(out)
    assert out.shape == (node_counts[-1], out_size)
    assert jnp.all(jnp.isfinite(out))

    ref = _ref_forward(blocks, h0, model.params)
    assert jnp.allclose(out, ref, atol=5e-2, rtol=5e-2), float(
        jnp.max(jnp.abs(out - ref)))

    print("KERNEL_OK")
</pallas_src>

<mosaic_0001>
module attributes {stable_mosaic.version = 11 : i64} {
  func.func @_fused_sage_kernel(%arg0: memref<128x128xbf16, #tpu.memory_space<vmem>>, %arg1: memref<128x128xbf16, #tpu.memory_space<vmem>>, %arg2: memref<128x128xbf16, #tpu.memory_space<vmem>>, %arg3: memref<128x128xbf16, #tpu.memory_space<vmem>>, %arg4: memref<1x128xf32, #tpu.memory_space<vmem>>, %arg5: memref<128x128xbf16, #tpu.memory_space<vmem>>, %arg6: memref<128x128xbf16, #tpu.memory_space<vmem>>, %arg7: memref<128x128xbf16, #tpu.memory_space<vmem>>, %arg8: memref<1x128xf32, #tpu.memory_space<vmem>>, %arg9: memref<128x128xbf16, #tpu.memory_space<vmem>>, %arg10: memref<128x128xbf16, #tpu.memory_space<vmem>>, %arg11: memref<128x128xbf16, #tpu.memory_space<vmem>>, %arg12: memref<1x128xf32, #tpu.memory_space<vmem>>, %arg13: memref<128x128xf32, #tpu.memory_space<vmem>>, %arg14: memref<128x128xbf16, #tpu.memory_space<vmem>>, %arg15: memref<128x128xbf16, #tpu.memory_space<vmem>>) attributes {dimension_semantics = [], scalar_prefetch = 0 : i64, scratch_operands = 2 : i64, tpu.core_type = #tpu.core_type<tc>} {
    %c0 = arith.constant 0 : index
    %c0_0 = arith.constant 0 : index
    %0 = vector.load %arg0[%c0, %c0_0] : memref<128x128xbf16, #tpu.memory_space<vmem>>, vector<128x128xbf16>
    %c0_1 = arith.constant 0 : index
    %c0_2 = arith.constant 0 : index
    %1 = vector.load %arg1[%c0_1, %c0_2] : memref<128x128xbf16, #tpu.memory_space<vmem>>, vector<128x128xbf16>
    %cst = arith.constant dense<0.000000e+00> : vector<128x128xf32>
    %2 = tpu.matmul %1, %0, %cst {dimension_numbers = #tpu.dot_dimension_numbers<[1], [0], [0], [1], [0, 0, 1, 1], [], []>} : vector<128x128xbf16>, vector<128x128xbf16>, vector<128x128xf32> -> vector<128x128xf32>
    %c0_3 = arith.constant 0 : index
    %c0_4 = arith.constant 0 : index
    %3 = vector.load %arg0[%c0_3, %c0_4] : memref<128x128xbf16, #tpu.memory_space<vmem>>, vector<128x128xbf16>
    %c0_5 = arith.constant 0 : index
    %c0_6 = arith.constant 0 : index
    %4 = vector.load %arg2[%c0_5, %c0_6] : memref<128x128xbf16, #tpu.memory_space<vmem>>, vector<128x128xbf16>
    %cst_7 = arith.constant dense<0.000000e+00> : vector<128x128xf32>
    %5 = tpu.matmul %3, %4, %cst_7 {dimension_numbers = #tpu.dot_dimension_numbers<[1], [0], [0], [1], [0, 0, 1, 1], [], []>} : vector<128x128xbf16>, vector<128x128xbf16>, vector<128x128xf32> -> vector<128x128xf32>
    %6 = arith.truncf %2 : vector<128x128xf32> to vector<128x128xbf16>
    %c0_8 = arith.constant 0 : index
    %c0_9 = arith.constant 0 : index
    %7 = vector.load %arg3[%c0_8, %c0_9] : memref<128x128xbf16, #tpu.memory_space<vmem>>, vector<128x128xbf16>
    %cst_10 = arith.constant dense<0.000000e+00> : vector<128x128xf32>
    %8 = tpu.matmul %6, %7, %cst_10 {dimension_numbers = #tpu.dot_dimension_numbers<[1], [0], [0], [1], [0, 0, 1, 1], [], []>} : vector<128x128xbf16>, vector<128x128xbf16>, vector<128x128xf32> -> vector<128x128xf32>
    %9 = arith.addf %5, %8 : vector<128x128xf32>
    %c0_11 = arith.constant 0 : index
    %c0_12 = arith.constant 0 : index
    %10 = vector.load %arg4[%c0_11, %c0_12] : memref<1x128xf32, #tpu.memory_space<vmem>>, vector<1x128xf32>
    %11 = vector.broadcast %10 : vector<1x128xf32> to vector<128x128xf32>
    %12 = arith.addf %9, %11 : vector<128x128xf32>
    %cst_13 = arith.constant 0.000000e+00 : f32
    %13 = vector.broadcast %cst_13 : f32 to vector<128x128xf32>
    %14 = arith.maximumf %12, %13 : vector<128x128xf32>
    %15 = arith.truncf %14 : vector<128x128xf32> to vector<128x128xbf16>
    %c0_14 = arith.constant 0 : index
    %c0_15 = arith.constant 0 : index
    %16 = vector.load %arg14[%c0_14, %c0_15] : memref<128x128xbf16, #tpu.memory_space<vmem>>, vector<128x128xbf16>
    tpu.vector_store %arg14[%c0_14, %c0_15], %15 {strides = array<i32>} : memref<128x128xbf16, #tpu.memory_space<vmem>>, vector<128x128xbf16>,
    %c0_16 = arith.constant 0 : index
    %c0_17 = arith.constant 0 : index
    %17 = vector.load %arg14[%c0_16, %c0_17] : memref<128x128xbf16, #tpu.memory_space<vmem>>, vector<128x128xbf16>
    %c0_18 = arith.constant 0 : index
    %c0_19 = arith.constant 0 : index
    %18 = vector.load %arg5[%c0_18, %c0_19] : memref<128x128xbf16, #tpu.memory_space<vmem>>, vector<128x128xbf16>
    %cst_20 = arith.constant dense<0.000000e+00> : vector<128x128xf32>
    %19 = tpu.matmul %18, %17, %cst_20 {dimension_numbers = #tpu.dot_dimension_numbers<[1], [0], [0], [1], [0, 0, 1, 1], [], []>} : vector<128x128xbf16>, vector<128x128xbf16>, vector<128x128xf32> -> vector<128x128xf32>
    %c0_21 = arith.constant 0 : index
    %c0_22 = arith.constant 0 : index
    %20 = vector.load %arg14[%c0_21, %c0_22] : memref<128x128xbf16, #tpu.memory_space<vmem>>, vector<128x128xbf16>
    %c0_23 = arith.constant 0 : index
    %c0_24 = arith.constant 0 : index
    %21 = vector.load %arg6[%c0_23, %c0_24] : memref<128x128xbf16, #tpu.memory_space<vmem>>, vector<128x128xbf16>
    %cst_25 = arith.constant dense<0.000000e+00> : vector<128x128xf32>
    %22 = tpu.matmul %20, %21, %cst_25 {dimension_numbers = #tpu.dot_dimension_numbers<[1], [0], [0], [1], [0, 0, 1, 1], [], []>} : vector<128x128xbf16>, vector<128x128xbf16>, vector<128x128xf32> -> vector<128x128xf32>
    %23 = arith.truncf %19 : vector<128x128xf32> to vector<128x128xbf16>
    %c0_26 = arith.constant 0 : index
    %c0_27 = arith.constant 0 : index
    %24 = vector.load %arg7[%c0_26, %c0_27] : memref<128x128xbf16, #tpu.memory_space<vmem>>, vector<128x128xbf16>
    %cst_28 = arith.constant dense<0.000000e+00> : vector<128x128xf32>
    %25 = tpu.matmul %23, %24, %cst_28 {dimension_numbers = #tpu.dot_dimension_numbers<[1], [0], [0], [1], [0, 0, 1, 1], [], []>} : vector<128x128xbf16>, vector<128x128xbf16>, vector<128x128xf32> -> vector<128x128xf32>
    %26 = arith.addf %22, %25 : vector<128x128xf32>
    %c0_29 = arith.constant 0 : index
    %c0_30 = arith.constant 0 : index
    %27 = vector.load %arg8[%c0_29, %c0_30] : memref<1x128xf32, #tpu.memory_space<vmem>>, vector<1x128xf32>
    %28 = vector.broadcast %27 : vector<1x128xf32> to vector<128x128xf32>
    %29 = arith.addf %26, %28 : vector<128x128xf32>
    %cst_31 = arith.constant 0.000000e+00 : f32
    %30 = vector.broadcast %cst_31 : f32 to vector<128x128xf32>
    %31 = arith.maximumf %29, %30 : vector<128x128xf32>
    %32 = arith.truncf %31 : vector<128x128xf32> to vector<128x128xbf16>
    %c0_32 = arith.constant 0 : index
    %c0_33 = arith.constant 0 : index
    %33 = vector.load %arg15[%c0_32, %c0_33] : memref<128x128xbf16, #tpu.memory_space<vmem>>, vector<128x128xbf16>
    tpu.vector_store %arg15[%c0_32, %c0_33], %32 {strides = array<i32>} : memref<128x128xbf16, #tpu.memory_space<vmem>>, vector<128x128xbf16>,
    %c0_34 = arith.constant 0 : index
    %c0_35 = arith.constant 0 : index
    %34 = vector.load %arg15[%c0_34, %c0_35] : memref<128x128xbf16, #tpu.memory_space<vmem>>, vector<128x128xbf16>
    %c0_36 = arith.constant 0 : index
    %c0_37 = arith.constant 0 : index
    %35 = vector.load %arg9[%c0_36, %c0_37] : memref<128x128xbf16, #tpu.memory_space<vmem>>, vector<128x128xbf16>
    %cst_38 = arith.constant dense<0.000000e+00> : vector<128x128xf32>
    %36 = tpu.matmul %35, %34, %cst_38 {dimension_numbers = #tpu.dot_dimension_numbers<[1], [0], [0], [1], [0, 0, 1, 1], [], []>} : vector<128x128xbf16>, vector<128x128xbf16>, vector<128x128xf32> -> vector<128x128xf32>
    %c0_39 = arith.constant 0 : index
    %c0_40 = arith.constant 0 : index
    %37 = vector.load %arg15[%c0_39, %c0_40] : memref<128x128xbf16, #tpu.memory_space<vmem>>, vector<128x128xbf16>
    %c0_41 = arith.constant 0 : index
    %c0_42 = arith.constant 0 : index
    %38 = vector.load %arg10[%c0_41, %c0_42] : memref<128x128xbf16, #tpu.memory_space<vmem>>, vector<128x128xbf16>
    %cst_43 = arith.constant dense<0.000000e+00> : vector<128x128xf32>
    %39 = tpu.matmul %37, %38, %cst_43 {dimension_numbers = #tpu.dot_dimension_numbers<[1], [0], [0], [1], [0, 0, 1, 1], [], []>} : vector<128x128xbf16>, vector<128x128xbf16>, vector<128x128xf32> -> vector<128x128xf32>
    %40 = arith.truncf %36 : vector<128x128xf32> to vector<128x128xbf16>
    %c0_44 = arith.constant 0 : index
    %c0_45 = arith.constant 0 : index
    %41 = vector.load %arg11[%c0_44, %c0_45] : memref<128x128xbf16, #tpu.memory_space<vmem>>, vector<128x128xbf16>
    %cst_46 = arith.constant dense<0.000000e+00> : vector<128x128xf32>
    %42 = tpu.matmul %40, %41, %cst_46 {dimension_numbers = #tpu.dot_dimension_numbers<[1], [0], [0], [1], [0, 0, 1, 1], [], []>} : vector<128x128xbf16>, vector<128x128xbf16>, vector<128x128xf32> -> vector<128x128xf32>
    %43 = arith.addf %39, %42 : vector<128x128xf32>
    %c0_47 = arith.constant 0 : index
    %c0_48 = arith.constant 0 : index
    %44 = vector.load %arg12[%c0_47, %c0_48] : memref<1x128xf32, #tpu.memory_space<vmem>>, vector<1x128xf32>
    %45 = vector.broadcast %44 : vector<1x128xf32> to vector<128x128xf32>
    %46 = arith.addf %43, %45 : vector<128x128xf32>
    %c0_49 = arith.constant 0 : index
    %c0_50 = arith.constant 0 : index
    %47 = vector.load %arg13[%c0_49, %c0_50] : memref<128x128xf32, #tpu.memory_space<vmem>>, vector<128x128xf32>
    tpu.vector_store %arg13[%c0_49, %c0_50], %46 {strides = array<i32>} : memref<128x128xf32, #tpu.memory_space<vmem>>, vector<128x128xf32>,
    return
  }
}

</mosaic_0001>

<bundles_post_ra>
// kernel: tpu_custom_call.1
= control target key start
LH: loop header
LB: loop body
LE: loop exit
PB: predicated region body
PF: predicated region fallthrough
CT: control target
= control target key end

     0   :  { %18 = vsyncpa [#allocation5], 0  ;;  %s3490_s0 = inlined_call_operand.hbm [shape: bf16[128,128], index: 0, kind: input, shape index: {}]   ;;  %s3491_s1 = inlined_call_operand.hbm [shape: bf16[128,128], index: 1, kind: input, shape index: {}]   ;;  %s3492_s2 = inlined_call_operand.hbm [shape: bf16[128,128], index: 2, kind: input, shape index: {}]   ;;  %s3493_s3 = inlined_call_operand.hbm [shape: bf16[128,128], index: 3, kind: input, shape index: {}]   ;;  %s3494_s4 = inlined_call_operand.vmem [shape: f32[1,128], index: 4, kind: input, shape index: {}]   ;;  %s3495_s5 = inlined_call_operand.hbm [shape: bf16[128,128], index: 5, kind: input, shape index: {}]   ;;  %s3496_s6 = inlined_call_operand.hbm [shape: bf16[128,128], index: 6, kind: input, shape index: {}]   ;;  %s3497_s7 = inlined_call_operand.hbm [shape: bf16[128,128], index: 7, kind: input, shape index: {}]   ;;  %s3498_s8 = inlined_call_operand.vmem [shape: f32[1,128], index: 8, kind: input, shape index: {}]   ;;  %s3499_s9 = inlined_call_operand.hbm [shape: bf16[128,128], index: 9, kind: input, shape index: {}]   ;;  %s3500_s10 = inlined_call_operand.hbm [shape: bf16[128,128], index: 10, kind: input, shape index: {}]   ;;  %s3501_s11 = inlined_call_operand.hbm [shape: bf16[128,128], index: 11, kind: input, shape index: {}]   ;;  %s3502_s12 = inlined_call_operand.vmem [shape: f32[1,128], index: 12, kind: input, shape index: {}]   ;;  %s3503_s13 = inlined_call_operand.hbm [shape: f32[128,128], index: 13, kind: output, shape index: {}]  }
   0x1   :  { %19 = vsyncpa [#allocation8], 0 }
   0x2   :  { %20 = vsyncpa [#allocation11], 0 }
   0x3   :  { %21 = vsyncpa [#allocation14], 0 }
   0x4   :  { %22 = vsyncpa [#allocation17], 0 }
   0x5   :  { %23 = vsyncpa [#allocation20], 0 }
   0x6   :  { %24 = vsyncpa [#allocation6], 0  ;;  %s3196_s25 = smov [#allocation7]   ;;  %s3197_s27 = smov [#allocation10]  }
   0x7   :  { %s42_s26 = sshll.u32 %s3196_s25, 4  ;;  %s66_s28 = sshll.u32 %s3197_s27, 4  ;;  %s43_s26 = int_to_ptr.vmem [resolvable:$true] %s42_s26  ;;  %s67_s28 = int_to_ptr.vmem [resolvable:$true] %s66_s28 }
   0x8   :  { %s2970_s29 = scalar_lea.vmem %s43_s26, 1024  ;;  %p2975_p1 = scmp.lt.s32.totalorder %s43_s26, %s43_s26 }
   0x9   :  { %p2971_p0 = scmp.ne.s32.totalorder %s43_s26, %s2970_s29  ;;  %p2976_p2 = scmp.lt.s32.totalorder %s2970_s29, %s2970_s29 }
   0xb   :  { %p2977_p3 = por %p2976_p2, %p2975_p1 }
   0xd   :  { %p2978_p4 = pnand %p2977_p3, %p2971_p0 }
   0xf   :  { %2981 = shalt.err (!%p2978_p4)
}
  0x10   :  { %s3198_s30 = smov 64   ;;  %s3199_s14 = smov 4  }
  0x11   :  { %48 = dma.hbm_to_vmem [thread:$0]  %s3491_s1, 1024, %s43_s26, [#allocation8], %s3198_s30, %s3198_s30, %s3199_s14  }
  0x12   :  { %s2990_s17 = scalar_lea.vmem %s67_s28, 1024  ;;  %p2995_p6 = scmp.lt.s32.totalorder %s67_s28, %s67_s28 }
  0x13   :  { %p2991_p5 = scmp.ne.s32.totalorder %s67_s28, %s2990_s17  ;;  %p2996_p7 = scmp.lt.s32.totalorder %s2990_s17, %s2990_s17 }
  0x15   :  { %p2997_p8 = por %p2996_p7, %p2995_p6 }
  0x17   :  { %p2998_p9 = pnand %p2997_p8, %p2991_p5 }
  0x19   :  { %3001 = shalt.err (!%p2998_p9)
}
  0x1a   :  { %72 = dma.hbm_to_vmem [thread:$0]  %s3493_s3, 1024, %s67_s28, [#allocation11], %s3198_s30, %s3198_s30, %s3199_s14  }
  0x1b   :  { %s3200_s20 = smov [#allocation13]   ;;  %s3201_s22 = smov [#allocation16]  }
  0x1c   :  { %s92_s21 = sshll.u32 %s3200_s20, 4  ;;  %s118_s23 = sshll.u32 %s3201_s22, 4  ;;  %s93_s21 = int_to_ptr.vmem [resolvable:$true] %s92_s21  ;;  %s119_s23 = int_to_ptr.vmem [resolvable:$true] %s118_s23 }
  0x1d   :  { %s3010_s1 = scalar_lea.vmem %s93_s21, 1024  ;;  %p3015_p11 = scmp.lt.s32.totalorder %s93_s21, %s93_s21 }
  0x1e   :  { %p3011_p10 = scmp.ne.s32.totalorder %s93_s21, %s3010_s1  ;;  %p3016_p12 = scmp.lt.s32.totalorder %s3010_s1, %s3010_s1 }
  0x20   :  { %p3017_p13 = por %p3016_p12, %p3015_p11 }
  0x22   :  { %p3018_p0 = pnand %p3017_p13, %p3011_p10 }
  0x24   :  { %3021 = shalt.err (!%p3018_p0)
}
  0x25   :  { %98 = dma.hbm_to_vmem [thread:$0]  %s3496_s6, 1024, %s93_s21, [#allocation14], %s3198_s30, %s3198_s30, %s3199_s14  }
  0x26   :  { %s3030_s3 = scalar_lea.vmem %s119_s23, 1024  ;;  %p3035_p2 = scmp.lt.s32.totalorder %s119_s23, %s119_s23 }
  0x27   :  { %p3031_p1 = scmp.ne.s32.totalorder %s119_s23, %s3030_s3  ;;  %p3036_p3 = scmp.lt.s32.totalorder %s3030_s3, %s3030_s3 }
  0x29   :  { %p3037_p4 = por %p3036_p3, %p3035_p2 }
  0x2b   :  { %p3038_p5 = pnand %p3037_p4, %p3031_p1 }
  0x2d   :  { %3041 = shalt.err (!%p3038_p5)
}
  0x2e   :  { %124 = dma.hbm_to_vmem [thread:$0]  %s3499_s9, 1024, %s119_s23, [#allocation17], %s3198_s30, %s3198_s30, %s3199_s14  }
  0x2f   :  { %s3202_s28 = smov [#allocation4]   ;;  %s3203_s15 = smov [#allocation9]  }
  0x30   :  { %s30_s29 = sshll.u32 %s3202_s28, 4  ;;  %s54_s16 = sshll.u32 %s3203_s15, 4  ;;  %s31_s29 = int_to_ptr.vmem [resolvable:$true] %s30_s29  ;;  %s55_s16 = int_to_ptr.vmem [resolvable:$true] %s54_s16 }
  0x31   :  { %s3050_s6 = scalar_lea.vmem %s31_s29, 1024  ;;  %p3055_p7 = scmp.lt.s32.totalorder %s31_s29, %s31_s29 }
  0x32   :  { %p3051_p6 = scmp.ne.s32.totalorder %s31_s29, %s3050_s6  ;;  %p3056_p8 = scmp.lt.s32.totalorder %s3050_s6, %s3050_s6 }
  0x34   :  { %p3057_p9 = por %p3056_p8, %p3055_p7 }
  0x36   :  { %p3058_p10 = pnand %p3057_p9, %p3051_p6 }
  0x38   :  { %3061 = shalt.err (!%p3058_p10)
}
  0x39   :  { %36 = dma.hbm_to_vmem [thread:$0]  %s3490_s0, 1024, %s31_s29, [#allocation5], %s3198_s30, %s3198_s30, %s3199_s14  }
  0x3a   :  { %s3070_s9 = scalar_lea.vmem %s55_s16, 1024  ;;  %p3075_p12 = scmp.lt.s32.totalorder %s55_s16, %s55_s16 }
  0x3b   :  { %p3071_p11 = scmp.ne.s32.totalorder %s55_s16, %s3070_s9  ;;  %p3076_p13 = scmp.lt.s32.totalorder %s3070_s9, %s3070_s9 }
  0x3d   :  { %p3077_p0 = por %p3076_p13, %p3075_p12 }
  0x3f   :  { %p3078_p1 = pnand %p3077_p0, %p3071_p11 }
  0x41   :  { %3081 = shalt.err (!%p3078_p1)
}
  0x42   :  { %60 = dma.hbm_to_vmem [thread:$0]  %s3492_s2, 1024, %s55_s16, [#allocation8], %s3198_s30, %s3198_s30, %s3199_s14  }
  0x43   :  { %s3204_s21 = smov [#allocation12]   ;;  %s3205_s23 = smov [#allocation15]  }
  0x44   :  { %s80_s22 = sshll.u32 %s3204_s21, 4  ;;  %s104_s1 = sshll.u32 %s3205_s23, 4  ;;  %s81_s22 = int_to_ptr.vmem [resolvable:$true] %s80_s22  ;;  %s105_s1 = int_to_ptr.vmem [resolvable:$true] %s104_s1 }
  0x45   :  { %s3090_s0 = scalar_lea.vmem %s81_s22, 1024  ;;  %p3095_p3 = scmp.lt.s32.totalorder %s81_s22, %s81_s22 }
  0x46   :  { %p3091_p2 = scmp.ne.s32.totalorder %s81_s22, %s3090_s0  ;;  %p3096_p4 = scmp.lt.s32.totalorder %s3090_s0, %s3090_s0 }
  0x48   :  { %p3097_p5 = por %p3096_p4, %p3095_p3 }
  0x4a   :  { %p3098_p6 = pnand %p3097_p5, %p3091_p2 }
  0x4c   :  { %3101 = shalt.err (!%p3098_p6)
}
  0x4d   :  { %86 = dma.hbm_to_vmem [thread:$0]  %s3495_s5, 1024, %s81_s22, [#allocation11], %s3198_s30, %s3198_s30, %s3199_s14  }
  0x4e   :  { %s3110_s2 = scalar_lea.vmem %s105_s1, 1024  ;;  %p3115_p8 = scmp.lt.s32.totalorder %s105_s1, %s105_s1 }
  0x4f   :  { %p3111_p7 = scmp.ne.s32.totalorder %s105_s1, %s3110_s2  ;;  %p3116_p9 = scmp.lt.s32.totalorder %s3110_s2, %s3110_s2 }
  0x51   :  { %p3117_p10 = por %p3116_p9, %p3115_p8 }
  0x53   :  { %p3118_p11 = pnand %p3117_p10, %p3111_p7 }
  0x55   :  { %3121 = shalt.err (!%p3118_p11)
}
  0x56   :  { %110 = dma.hbm_to_vmem [thread:$0]  %s3497_s7, 1024, %s105_s1, [#allocation14], %s3198_s30, %s3198_s30, %s3199_s14  }
  0x57   :  { %s3206_s27 = smov [#allocation18]   ;;  %s3207_s29 = smov [#allocation19]  }
  0x58   :  { %s130_s28 = sshll.u32 %s3206_s27, 4  ;;  %s142_s15 = sshll.u32 %s3207_s29, 4  ;;  %s131_s28 = int_to_ptr.vmem [resolvable:$true] %s130_s28  ;;  %s143_s15 = int_to_ptr.vmem [resolvable:$true] %s142_s15 }
  0x59   :  { %s3130_s5 = scalar_lea.vmem %s131_s28, 1024  ;;  %p3135_p13 = scmp.lt.s32.totalorder %s131_s28, %s131_s28 }
  0x5a   :  { %p3131_p12 = scmp.ne.s32.totalorder %s131_s28, %s3130_s5  ;;  %p3136_p0 = scmp.lt.s32.totalorder %s3130_s5, %s3130_s5 }
  0x5c   :  { %p3137_p1 = por %p3136_p0, %p3135_p13 }
  0x5e   :  { %p3138_p2 = pnand %p3137_p1, %p3131_p12 }
  0x60   :  { %3141 = shalt.err (!%p3138_p2)
}
  0x61   :  { %136 = dma.hbm_to_vmem [thread:$0]  %s3500_s10, 1024, %s131_s28, [#allocation17], %s3198_s30, %s3198_s30, %s3199_s14  }
  0x62   :  { %s3150_s7 = scalar_lea.vmem %s143_s15, 1024  ;;  %p3155_p4 = scmp.lt.s32.totalorder %s143_s15, %s143_s15 }
  0x63   :  { %p3151_p3 = scmp.ne.s32.totalorder %s143_s15, %s3150_s7  ;;  %p3156_p5 = scmp.lt.s32.totalorder %s3150_s7, %s3150_s7 }
  0x65   :  { %p3157_p6 = por %p3156_p5, %p3155_p4 }
  0x67   :  { %p3158_p7 = pnand %p3157_p6, %p3151_p3 }
  0x69   :  { %3161 = shalt.err (!%p3158_p7)
}
  0x6a   :  { %148 = dma.hbm_to_vmem [thread:$0]  %s3501_s11, 1024, %s143_s15, [#allocation20], %s3198_s30, %s3198_s30, %s3199_s14  }
  0x6b   :  { %3182 = dma.done.wait [#allocation5], 1024  }
  0x6c   :  { %3183 = vsyncadd [#allocation5], 4294966272 }
  0x6d   :  { %3184 = dma.done.wait [#allocation8], 2048  }
  0x6e   :  { %3185 = vsyncadd [#allocation8], 4294965248 }
  0x6f   :  { %3186 = dma.done.wait [#allocation11], 2048  }
  0x70   :  { %3187 = vsyncadd [#allocation11], 4294965248 }
  0x71   :  { %3188 = dma.done.wait [#allocation14], 2048  }
  0x72   :  { %3189 = vsyncadd [#allocation14], 4294965248 }
  0x73   :  { %3190 = dma.done.wait [#allocation17], 2048  }
  0x74   :  { %3191 = vsyncadd [#allocation17], 4294965248 }
  0x75   :  { %3192 = dma.done.wait [#allocation20], 1024  }
  0x76   :  { %3193 = vsyncadd [#allocation20], 4294966272  ;;  %v3341_v0 = vld [vmem:[#allocation4 + $0x38] sm:$0xff]   ;;  %v3343_v1 = vld [vmem:[#allocation4 + $0x30] sm:$0xff]  }
  0x77   :  { %2547 = vmatprep.subr.bf16.mxu0 %v3341_v0  ;;  %v3348_v2 = vld [vmem:[#allocation4 + $0x28] sm:$0xff]   ;;  %v3351_v3 = vld [vmem:[#allocation4 + $0x20] sm:$0xff]   ;;  %v3356_v5 = vld [vmem:[#allocation4 + $0x18] sm:$0xff]  }
  0x78   :  { %2548 = vmatpush3.bf16.msra.mxu0 %v3341_v0  ;;  %v2874_v4 = vld [vmem:[#allocation7] sm:$0xff]   ;;  %v3360_v6 = vld [vmem:[#allocation4 + $0x10] sm:$0xff]   ;;  %v2884_v7 = vld [vmem:[#allocation10 + $0x38] sm:$0xff]  }
  0x79   :  { %2549 = vmatprep.subr.bf16.mxu0 %v3343_v1  ;;  %2563 = vmatprep.mubr.bf16.mxu0 %v2874_v4  ;;  %v3363_v8 = vld [vmem:[#allocation4 + $0x8] sm:$0xff]   ;;  %v2886_v9 = vld [vmem:[#allocation10 + $0x30] sm:$0xff]   ;;  %v2873_v11 = vld [vmem:[#allocation4] sm:$0xff]  }
  0x7a   :  { %2579 = vmatprep.subr.bf16.mxu1 %v2884_v7  ;;  %v2888_v10 = vld [vmem:[#allocation10 + $0x28] sm:$0xff]   ;;  %v2890_v12 = vld [vmem:[#allocation10 + $0x20] sm:$0xff]   ;;  %v2882_v13 = vld [vmem:[#allocation9 + $0x38] sm:$0xff]  }
  0x7b   :  { %2580 = vmatpush3.bf16.msra.mxu1 %v2884_v7  ;;  %v2875_v14 = vld [vmem:[#allocation7 + $0x8] sm:$0xff]   ;;  %v2892_v15 = vld [vmem:[#allocation10 + $0x18] sm:$0xff]   ;;  %v2876_v16 = vld [vmem:[#allocation7 + $0x10] sm:$0xff]  }
  0x7c   :  { %2550 = vmatpush3.bf16.msra.mxu0 %v3343_v1  ;;  %2581 = vmatprep.subr.bf16.mxu1 %v2886_v9  ;;  %v2883_v17 = vld [vmem:[#allocation9 + $0x30] sm:$0xff]   ;;  %v2885_v19 = vld [vmem:[#allocation9 + $0x28] sm:$0xff]   ;;  %v2877_v20 = vld [vmem:[#allocation7 + $0x18] sm:$0xff]  }
  0x7d   :  { %2551 = vmatprep.subr.bf16.mxu0 %v3348_v2  ;;  %v2894_v18 = vld [vmem:[#allocation10 + $0x10] sm:$0xff]   ;;  %v2878_v21 = vld [vmem:[#allocation7 + $0x20] sm:$0xff]   ;;  %v2889_v23 = vld [vmem:[#allocation9 + $0x18] sm:$0xff]  }
  0x7e   :  { %v2887_v22 = vld [vmem:[#allocation9 + $0x20] sm:$0xff]   ;;  %v2879_v24 = vld [vmem:[#allocation7 + $0x28] sm:$0xff]   ;;  %v2880_v25 = vld [vmem:[#allocation7 + $0x30] sm:$0xff]  }
  0x7f   :  { %2582 = vmatpush3.bf16.msra.mxu1 %v2886_v9  ;;  %v2891_v26 = vld [vmem:[#allocation9 + $0x10] sm:$0xff]   ;;  %v2893_v27 = vld [vmem:[#allocation9 + $0x8] sm:$0xff]   ;;  %v2881_v28 = vld [vmem:[#allocation7 + $0x38] sm:$0xff]  }
  0x80   :  { %2552 = vmatpush3.bf16.msra.mxu0 %v3348_v2  ;;  %2583 = vmatprep.subr.bf16.mxu1 %v2888_v10  ;;  %v2895_v29 = vld [vmem:[#allocation9] sm:$0xff]   ;;  %v2896_v30 = vld [vmem:[#allocation10 + $0x8] sm:$0xff]  }
  0x81   :  { %2553 = vmatprep.subr.bf16.mxu0 %v3351_v3  ;;  %v2897_v31 = vld [vmem:[#allocation10] sm:$0xff]  }
  0x82   :  { %v2906_v56 = vld [vmem:[#allocation12] sm:$0xff]  }
  0x83   :  { %2584 = vmatpush3.bf16.msra.mxu1 %v2888_v10 }
  0x84   :  { %2554 = vmatpush3.bf16.msra.mxu0 %v3351_v3  ;;  %2585 = vmatprep.subr.bf16.mxu1 %v2890_v12 }
  0x85   :  { %2555 = vmatprep.subr.bf16.mxu0 %v3356_v5 }
  0x87   :  { %2586 = vmatpush3.bf16.msra.mxu1 %v2890_v12  ;;  %v2922_v12 = vld [vmem:[#allocation15 + $0x38] sm:$0xff]  }
  0x88   :  { %2556 = vmatpush3.bf16.msra.mxu0 %v3356_v5  ;;  %2587 = vmatprep.subr.bf16.mxu1 %v2892_v15 }
  0x89   :  { %2557 = vmatprep.subr.bf16.mxu0 %v3360_v6 }
  0x8b   :  { %2588 = vmatpush3.bf16.msra.mxu1 %v2892_v15 }
  0x8c   :  { %2558 = vmatpush3.bf16.msra.mxu0 %v3360_v6  ;;  %2589 = vmatprep.subr.bf16.mxu1 %v2894_v18 }
  0x8d   :  { %2559 = vmatprep.subr.bf16.mxu0 %v3363_v8 }
  0x8f   :  { %2590 = vmatpush3.bf16.msra.mxu1 %v2894_v18 }
  0x90   :  { %2560 = vmatpush3.bf16.msra.mxu0 %v3363_v8  ;;  %2591 = vmatprep.subr.bf16.mxu1 %v2896_v30 }
  0x91   :  { %2561 = vmatprep.subr.bf16.mxu0 %v2873_v11 }
  0x93   :  { %2592 = vmatpush3.bf16.msra.mxu1 %v2896_v30 }
  0x94   :  { %2562 = vmatpush3.bf16.msra.mxu0 %v2873_v11  ;;  %2593 = vmatprep.subr.bf16.mxu1 %v2897_v31 }
  0x95   :  { %2611 = vmatprep.subr.bf16.mxu0 %v2882_v13 }
  0x97   :  { %2564 = vmatmul.mubr.bf16.vlgmr.msra.gmra.mxu0 %v2875_v14  ;;  %2594 = vmatpush3.bf16.msra.mxu1 %v2897_v31 }
  0x98   :  { %2567 = vmatprep.mubr.bf16.mxu0 %v2876_v16  ;;  %2612 = vmatpush3.bf16.msra.mxu0 %v2882_v13  ;;  %v2923_v13 = vld [vmem:[#allocation15 + $0x30] sm:$0xff]  }
  0x99   :  { %2613 = vmatprep.subr.bf16.mxu0 %v2883_v17 }
  0x9c   :  { %2614 = vmatpush3.bf16.msra.mxu0 %v2883_v17 }
  0x9d   :  { %2615 = vmatprep.subr.bf16.mxu0 %v2885_v19 }
  0x9f   :  { %2568 = vmatmul.mubr.bf16.gmra.mxu0 %v2877_v20 }
  0xa0   :  { %2571 = vmatprep.mubr.bf16.mxu0 %v2878_v21  ;;  %2616 = vmatpush3.bf16.msra.mxu0 %v2885_v19 }
  0xa1   :  { %2617 = vmatprep.subr.bf16.mxu0 %v2887_v22 }
  0xa4   :  { %2618 = vmatpush3.bf16.msra.mxu0 %v2887_v22 }
  0xa5   :  { %2619 = vmatprep.subr.bf16.mxu0 %v2889_v23 }
  0xa7   :  { %2572 = vmatmul.mubr.bf16.gmra.mxu0 %v2879_v24  ;;  %v2924_v24 = vld [vmem:[#allocation15 + $0x28] sm:$0xff]  }
  0xa8   :  { %2575 = vmatprep.mubr.bf16.mxu0 %v2880_v25  ;;  %2620 = vmatpush3.bf16.msra.mxu0 %v2889_v23 }
  0xa9   :  { %2621 = vmatprep.subr.bf16.mxu0 %v2891_v26 }
  0xac   :  { %2622 = vmatpush3.bf16.msra.mxu0 %v2891_v26 }
  0xad   :  { %2623 = vmatprep.subr.bf16.mxu0 %v2893_v27 }
  0xaf   :  { %2576 = vmatmul.mubr.bf16.gmra.mxu0 %v2881_v28 }
  0xb0   :  { %2624 = vmatpush3.bf16.msra.mxu0 %v2893_v27  ;;  %2627 = vmatprep.mubr.bf16.mxu0 %v2873_v11 }
  0xb1   :  { %2625 = vmatprep.subr.bf16.mxu0 %v2895_v29 }
  0xb4   :  { %2626 = vmatpush3.bf16.msra.mxu0 %v2895_v29 }
  0xb5   :  { %2675 = vmatprep.subr.bf16.mxu0 %v2922_v12 }
  0xb7   :  { %2628 = vmatmul.mubr.bf16.vlgmr.msra.gmra.mxu0 %v3363_v8 }
  0xb8   :  { %2631 = vmatprep.mubr.bf16.mxu0 %v3360_v6  ;;  %2676 = vmatpush3.bf16.msra.mxu0 %v2922_v12 }
  0xb9   :  { %2677 = vmatprep.subr.bf16.mxu0 %v2923_v13 }
  0xbc   :  { %2678 = vmatpush3.bf16.msra.mxu0 %v2923_v13 }
  0xbd   :  { %2679 = vmatprep.subr.bf16.mxu0 %v2924_v24 }
  0xbf   :  { %2632 = vmatmul.mubr.bf16.gmra.mxu0 %v3356_v5 }
  0xc0   :  { %2635 = vmatprep.mubr.bf16.mxu0 %v3351_v3  ;;  %v3379_v3 = vld [vmem:[%s3494_s4] ss:$0 sm:$0xff]  ;;  %2680 = vmatpush3.bf16.msra.mxu0 %v2924_v24 }
  0xc7   :  { %2636 = vmatmul.mubr.bf16.gmra.mxu0 %v3348_v2 }
  0xc8   :  { %2639 = vmatprep.mubr.bf16.mxu0 %v3343_v1 }
  0xcf   :  { %2640 = vmatmul.mubr.bf16.gmra.mxu0 %v3341_v0 }
 0x157   :  { %v2565_v32 = vpop.f32.mrf.mxu0 }
 0x159   :  { %v344_v33 = vpop.f32.mrf.mxu0 }
 0x15b   :  { %v2566_v34 = vpop.f32.mrf.mxu0 }
 0x15c   :  { %v424_v37 = vpack.c.bf16 %v2566_v34, %v2565_v32 }
 0x15d   :  { %v347_v35 = vpop.f32.mrf.mxu0 }
 0x15e   :  { %v423_v36 = vpack.c.bf16 %v347_v35, %v344_v33  ;;  %v2925_v35 = vld [vmem:[#allocation15 + $0x20] sm:$0xff]  }
 0x15f   :  { %v2569_v38 = vpop.f32.mrf.mxu0  ;;  %2681 = vmatprep.subr.bf16.mxu0 %v2925_v35 }
 0x160   :  { %2595 = vmatprep.mubr.bf16.mxu1 %v423_v36  ;;  %2682 = vmatpush3.bf16.msra.mxu0 %v2925_v35  ;;  %v2909_v35 = vld [vmem:[#allocation13 + $0x30] sm:$0xff]  }
 0x161   :  { %v360_v39 = vpop.f32.mrf.mxu0  ;;  %2596 = vmatmul.mubr.bf16.vlgmr.msra.gmra.mxu1 %v424_v37 }
 0x163   :  { %v2570_v40 = vpop.f32.mrf.mxu0 }
 0x164   :  { %v426_v43 = vpack.c.bf16 %v2570_v40, %v2569_v38 }
 0x165   :  { %v363_v41 = vpop.f32.mrf.mxu0 }
 0x166   :  { %v425_v42 = vpack.c.bf16 %v363_v41, %v360_v39 }
 0x167   :  { %v2573_v44 = vpop.f32.mrf.mxu0 }
 0x168   :  { %2599 = vmatprep.mubr.bf16.mxu1 %v425_v42 }
 0x169   :  { %v376_v45 = vpop.f32.mrf.mxu0  ;;  %2600 = vmatmul.mubr.bf16.gmra.mxu1 %v426_v43 }
 0x16b   :  { %v2574_v46 = vpop.f32.mrf.mxu0 }
 0x16c   :  { %v428_v49 = vpack.c.bf16 %v2574_v46, %v2573_v44  ;;  %v2926_v46 = vld [vmem:[#allocation15 + $0x18] sm:$0xff]  }
 0x16d   :  { %v379_v47 = vpop.f32.mrf.mxu0  ;;  %2683 = vmatprep.subr.bf16.mxu0 %v2926_v46 }
 0x16e   :  { %v427_v48 = vpack.c.bf16 %v379_v47, %v376_v45  ;;  %2684 = vmatpush3.bf16.msra.mxu0 %v2926_v46  ;;  %v2921_v46 = vld [vmem:[#allocation13] sm:$0xff]  }
 0x16f   :  { %v2577_v50 = vpop.f32.mrf.mxu0 }
 0x170   :  { %2603 = vmatprep.mubr.bf16.mxu1 %v427_v48 }
 0x171   :  { %v392_v51 = vpop.f32.mrf.mxu0  ;;  %2604 = vmatmul.mubr.bf16.gmra.mxu1 %v428_v49 }
 0x173   :  { %v2578_v52 = vpop.f32.mrf.mxu0 }
 0x174   :  { %v430_v55 = vpack.c.bf16 %v2578_v52, %v2577_v50 }
 0x175   :  { %v395_v53 = vpop.f32.mrf.mxu0 }
 0x176   :  { %v429_v54 = vpack.c.bf16 %v395_v53, %v392_v51 }
 0x177   :  { %v2629_v57 = vpop.f32.mrf.mxu0 }
 0x178   :  { %2607 = vmatprep.mubr.bf16.mxu1 %v429_v54 }
 0x179   :  { %2608 = vmatmul.mubr.bf16.gmra.mxu1 %v430_v55  ;;  %v674_v58 = vpop.f32.mrf.mxu0 }
 0x17a   :  { %2659 = vmatprep.mubr.bf16.mxu1 %v2906_v56 }
 0x17b   :  { %v2630_v59 = vpop.f32.mrf.mxu0 }
 0x17d   :  { %v677_v60 = vpop.f32.mrf.mxu0 }
 0x17f   :  { %v2633_v61 = vpop.f32.mrf.mxu0 }
 0x181   :  { %v690_v62 = vpop.f32.mrf.mxu0 }
 0x183   :  { %v2634_v63 = vpop.f32.mrf.mxu0 }
 0x185   :  { %v693_v0 = vpop.f32.mrf.mxu0 }
 0x187   :  { %v2637_v5 = vpop.f32.mrf.mxu0 }
 0x189   :  { %v706_v11 = vpop.f32.mrf.mxu0 }
 0x18b   :  { %v2638_v23 = vpop.f32.mrf.mxu0 }
 0x18d   :  { %v709_v34 = vpop.f32.mrf.mxu0 }
 0x18f   :  { %v2641_v45 = vpop.f32.mrf.mxu0 }
 0x191   :  { %v722_v55 = vpop.f32.mrf.mxu0 }
 0x221   :  { %v2597_v1 = vpop.f32.mrf.mxu1 }
 0x222   :  { %v683_v2 = vadd.f32 %v2629_v57, %v2597_v1  ;;  %v2927_v57 = vld [vmem:[#allocation15 + $0x10] sm:$0xff]  }
 0x223   :  { %v529_v4 = vpop.f32.mrf.mxu1  ;;  %2685 = vmatprep.subr.bf16.mxu0 %v2927_v57 }
 0x224   :  { %v675_v6 = vadd.f32 %v674_v58, %v529_v4  ;;  %v746_v8 = vadd.f32 %v3379_v3, %v683_v2  ;;  %v2642_v2 = vpop.f32.mrf.mxu0  ;;  %2686 = vmatpush3.bf16.msra.mxu0 %v2927_v57 }
 0x225   :  { %v2598_v7 = vpop.f32.mrf.mxu1 }
 0x226   :  { %v686_v9 = vadd.f32 %v2630_v59, %v2598_v7  ;;  %v744_v14 = vadd.f32 %v3379_v3, %v675_v6  ;;  %v762_v18 = vmax.f32 %v746_v8, 0.0  ;;  %v725_v13 = vpop.f32.mrf.mxu0 }
 0x227   :  { %v532_v10 = vpop.f32.mrf.mxu1 }
 0x228   :  { %v747_v15 = vadd.f32 %v3379_v3, %v686_v9  ;;  %v678_v16 = vadd.f32 %v677_v60, %v532_v10  ;;  %v760_v25 = vmax.f32 %v744_v14, 0.0 }
 0x229   :  { %v2601_v17 = vpop.f32.mrf.mxu1 }
 0x22a   :  { %v763_v19 = vmax.f32 %v747_v15, 0.0  ;;  %v745_v20 = vadd.f32 %v3379_v3, %v678_v16  ;;  %v699_v21 = vadd.f32 %v2633_v61, %v2601_v17 }
 0x22b   :  { %v545_v22 = vpop.f32.mrf.mxu1 }
 0x22c   :  { %v2317_v26 = vpack.c.bf16 %v763_v19, %v762_v18  ;;  %v761_v27 = vmax.f32 %v745_v20, 0.0  ;;  %v691_v28 = vadd.f32 %v690_v62, %v545_v22  ;;  %v750_v31 = vadd.f32 %v3379_v3, %v699_v21 }
 0x22d   :  { %v2602_v29 = vpop.f32.mrf.mxu1 }
 0x22e   :  { %2389 = vst [vmem:[#allocation2 + $0x8] sm:$0xff] %v2317_v26   ;;  %v2312_v30 = vpack.c.bf16 %v761_v27, %v760_v25  ;;  %v702_v32 = vadd.f32 %v2634_v63, %v2602_v29  ;;  %v748_v36 = vadd.f32 %v3379_v3, %v691_v28  ;;  %v766_v40 = vmax.f32 %v750_v31, 0.0 }
 0x22f   :  { %v548_v33 = vpop.f32.mrf.mxu1 }
 0x230   :  { %2313 = vst [vmem:[#allocation2] sm:$0xff] %v2312_v30   ;;  %v751_v37 = vadd.f32 %v3379_v3, %v702_v32  ;;  %v694_v38 = vadd.f32 %v693_v0, %v548_v33  ;;  %v764_v47 = vmax.f32 %v748_v36, 0.0  ;;  %v2908_v32 = vld [vmem:[#allocation13 + $0x38] sm:$0xff]   ;;  %v2907_v33 = vld [vmem:[#allocation12 + $0x8] sm:$0xff]  }
 0x231   :  { %v2605_v39 = vpop.f32.mrf.mxu1  ;;  %v2912_v36 = vld [vmem:[#allocation13 + $0x28] sm:$0xff]  }
 0x232   :  { %v767_v41 = vmax.f32 %v751_v37, 0.0  ;;  %v749_v42 = vadd.f32 %v3379_v3, %v694_v38  ;;  %v715_v43 = vadd.f32 %v2637_v5, %v2605_v39  ;;  %v2911_v37 = vld [vmem:[#allocation12 + $0x18] sm:$0xff]   ;;  %v2914_v38 = vld [vmem:[#allocation12 + $0x20] sm:$0xff]  }
 0x233   :  { %v561_v44 = vpop.f32.mrf.mxu1  ;;  %v2913_v39 = vld [vmem:[#allocation13 + $0x20] sm:$0xff]  }
 0x234   :  { %v2327_v48 = vpack.c.bf16 %v767_v41, %v766_v40  ;;  %v765_v49 = vmax.f32 %v749_v42, 0.0  ;;  %v707_v50 = vadd.f32 %v706_v11, %v561_v44  ;;  %v754_v53 = vadd.f32 %v3379_v3, %v715_v43  ;;  %v2916_v40 = vld [vmem:[#allocation13 + $0x18] sm:$0xff]   ;;  %v2915_v41 = vld [vmem:[#allocation12 + $0x28] sm:$0xff]   ;;  %v2918_v42 = vld [vmem:[#allocation12 + $0x30] sm:$0xff]  }
 0x235   :  { %v2606_v51 = vpop.f32.mrf.mxu1  ;;  %v2904_v30 = vld [vmem:[#allocation2 + $0x8] sm:$0xff]   ;;  %v2917_v43 = vld [vmem:[#allocation13 + $0x10] sm:$0xff]  }
 0x236   :  { %2391 = vst [vmem:[#allocation2 + $0x18] sm:$0xff] %v2327_v48   ;;  %v2322_v52 = vpack.c.bf16 %v765_v49, %v764_v47  ;;  %v718_v54 = vadd.f32 %v2638_v23, %v2606_v51  ;;  %v752_v58 = vadd.f32 %v3379_v3, %v707_v50  ;;  %v770_v62 = vmax.f32 %v754_v53, 0.0  ;;  %v2920_v44 = vld [vmem:[#allocation13 + $0x8] sm:$0xff]   ;;  %v2929_v48 = vld [vmem:[#allocation15] sm:$0xff]  }
 0x237   :  { %v564_v56 = vpop.f32.mrf.mxu1  ;;  %v2905_v31 = vld [vmem:[#allocation2] sm:$0xff]   ;;  %v2928_v47 = vld [vmem:[#allocation15 + $0x8] sm:$0xff]  }
 0x238   :  { %2390 = vst [vmem:[#allocation2 + $0x10] sm:$0xff] %v2322_v52   ;;  %v755_v59 = vadd.f32 %v3379_v3, %v718_v54  ;;  %v710_v60 = vadd.f32 %v709_v34, %v564_v56  ;;  %v768_v5 = vmax.f32 %v752_v58, 0.0  ;;  %v2910_v34 = vld [vmem:[#allocation12 + $0x10] sm:$0xff]   ;;  %2687 = vmatprep.subr.bf16.mxu0 %v2928_v47 }
 0x239   :  { %v2609_v61 = vpop.f32.mrf.mxu1  ;;  %2688 = vmatpush3.bf16.msra.mxu0 %v2928_v47 }
 0x23a   :  { %v771_v63 = vmax.f32 %v755_v59, 0.0  ;;  %v753_v0 = vadd.f32 %v3379_v3, %v710_v60  ;;  %v731_v1 = vadd.f32 %v2641_v45, %v2609_v61  ;;  %v2919_v45 = vld [vmem:[#allocation12 + $0x38] sm:$0xff]   ;;  %2689 = vmatprep.subr.bf16.mxu0 %v2929_v48 }
 0x23b   :  { %v577_v4 = vpop.f32.mrf.mxu1 }
 0x23c   :  { %v2337_v6 = vpack.c.bf16 %v771_v63, %v770_v62  ;;  %v769_v7 = vmax.f32 %v753_v0, 0.0  ;;  %v723_v8 = vadd.f32 %v722_v55, %v577_v4  ;;  %v758_v11 = vadd.f32 %v3379_v3, %v731_v1 }
 0x23d   :  { %v2610_v9 = vpop.f32.mrf.mxu1  ;;  %v2902_v28 = vld [vmem:[#allocation2 + $0x18] sm:$0xff]   ;;  %2690 = vmatpush3.bf16.msra.mxu0 %v2929_v48 }
 0x23e   :  { %2393 = vst [vmem:[#allocation2 + $0x28] sm:$0xff] %v2337_v6   ;;  %v2332_v10 = vpack.c.bf16 %v769_v7, %v768_v5  ;;  %v734_v12 = vadd.f32 %v2642_v2, %v2610_v9  ;;  %v756_v15 = vadd.f32 %v3379_v3, %v723_v8  ;;  %v774_v18 = vmax.f32 %v758_v11, 0.0 }
 0x23f   :  { %v580_v14 = vpop.f32.mrf.mxu1  ;;  %v2903_v29 = vld [vmem:[#allocation2 + $0x10] sm:$0xff]  }
 0x240   :  { %2392 = vst [vmem:[#allocation2 + $0x20] sm:$0xff] %v2332_v10   ;;  %v759_v16 = vadd.f32 %v3379_v3, %v734_v12  ;;  %v726_v17 = vadd.f32 %v725_v13, %v580_v14  ;;  %v772_v21 = vmax.f32 %v756_v15, 0.0  ;;  %v2938_v10 = vld [vmem:[#allocation16] sm:$0xff]  }
 0x242   :  { %v775_v19 = vmax.f32 %v759_v16, 0.0  ;;  %v757_v20 = vadd.f32 %v3379_v3, %v726_v17  ;;  %v2954_v17 = vld [vmem:[#allocation19 + $0x38] sm:$0xff]  }
 0x244   :  { %v2347_v22 = vpack.c.bf16 %v775_v19, %v774_v18  ;;  %v773_v23 = vmax.f32 %v757_v20, 0.0  ;;  %v2955_v18 = vld [vmem:[#allocation19 + $0x30] sm:$0xff]   ;;  %v2956_v20 = vld [vmem:[#allocation19 + $0x28] sm:$0xff]  }
 0x245   :  { %v2900_v27 = vld [vmem:[#allocation2 + $0x28] sm:$0xff]  }
 0x246   :  { %2395 = vst [vmem:[#allocation2 + $0x38] sm:$0xff] %v2347_v22   ;;  %v2342_v24 = vpack.c.bf16 %v773_v23, %v772_v21  ;;  %v2957_v22 = vld [vmem:[#allocation19 + $0x20] sm:$0xff]  }
 0x247   :  { %v2901_v3 = vld [vmem:[#allocation2 + $0x20] sm:$0xff]  }
 0x248   :  { %2394 = vst [vmem:[#allocation2 + $0x30] sm:$0xff] %v2342_v24  }
 0x24d   :  { %v3397_v25 = vld [vmem:[#allocation2 + $0x38] sm:$0xff]  }
 0x24e   :  { %2643 = vmatprep.subr.bf16.mxu1 %v3397_v25 }
 0x24f   :  { %v3400_v26 = vld [vmem:[#allocation2 + $0x30] sm:$0xff]   ;;  %2644 = vmatpush3.bf16.msra.mxu1 %v3397_v25 }
 0x250   :  { %2645 = vmatprep.subr.bf16.mxu1 %v3400_v26 }
 0x253   :  { %2646 = vmatpush3.bf16.msra.mxu1 %v3400_v26 }
 0x254   :  { %2647 = vmatprep.subr.bf16.mxu1 %v2900_v27 }
 0x257   :  { %2648 = vmatpush3.bf16.msra.mxu1 %v2900_v27 }
 0x258   :  { %2649 = vmatprep.subr.bf16.mxu1 %v2901_v3 }
 0x25b   :  { %2650 = vmatpush3.bf16.msra.mxu1 %v2901_v3 }
 0x25c   :  { %2651 = vmatprep.subr.bf16.mxu1 %v2902_v28 }
 0x25f   :  { %2652 = vmatpush3.bf16.msra.mxu1 %v2902_v28 }
 0x260   :  { %2653 = vmatprep.subr.bf16.mxu1 %v2903_v29 }
 0x263   :  { %2654 = vmatpush3.bf16.msra.mxu1 %v2903_v29 }
 0x264   :  { %2655 = vmatprep.subr.bf16.mxu1 %v2904_v30 }
 0x267   :  { %2656 = vmatpush3.bf16.msra.mxu1 %v2904_v30 }
 0x268   :  { %2657 = vmatprep.subr.bf16.mxu1 %v2905_v31 }
 0x26b   :  { %2658 = vmatpush3.bf16.msra.mxu1 %v2905_v31 }
 0x26c   :  { %2707 = vmatprep.subr.bf16.mxu1 %v2908_v32 }
 0x26e   :  { %2660 = vmatmul.mubr.bf16.vlgmr.msra.gmra.mxu1 %v2907_v33 }
 0x26f   :  { %2708 = vmatpush3.bf16.msra.mxu1 %v2908_v32  ;;  %2663 = vmatprep.mubr.bf16.mxu1 %v2910_v34  ;;  %v2959_v34 = vld [vmem:[#allocation19 + $0x10] sm:$0xff]  }
 0x270   :  { %2709 = vmatprep.subr.bf16.mxu1 %v2909_v35 }
 0x273   :  { %2710 = vmatpush3.bf16.msra.mxu1 %v2909_v35 }
 0x274   :  { %2711 = vmatprep.subr.bf16.mxu1 %v2912_v36 }
 0x276   :  { %2664 = vmatmul.mubr.bf16.gmra.mxu1 %v2911_v37 }
 0x277   :  { %2712 = vmatpush3.bf16.msra.mxu1 %v2912_v36  ;;  %2667 = vmatprep.mubr.bf16.mxu1 %v2914_v38 }
 0x278   :  { %2713 = vmatprep.subr.bf16.mxu1 %v2913_v39 }
 0x27b   :  { %2714 = vmatpush3.bf16.msra.mxu1 %v2913_v39 }
 0x27c   :  { %2715 = vmatprep.subr.bf16.mxu1 %v2916_v40 }
 0x27e   :  { %2668 = vmatmul.mubr.bf16.gmra.mxu1 %v2915_v41 }
 0x27f   :  { %2716 = vmatpush3.bf16.msra.mxu1 %v2916_v40  ;;  %2671 = vmatprep.mubr.bf16.mxu1 %v2918_v42 }
 0x280   :  { %2717 = vmatprep.subr.bf16.mxu1 %v2917_v43 }
 0x283   :  { %2718 = vmatpush3.bf16.msra.mxu1 %v2917_v43 }
 0x284   :  { %2719 = vmatprep.subr.bf16.mxu1 %v2920_v44 }
 0x286   :  { %2672 = vmatmul.mubr.bf16.gmra.mxu1 %v2919_v45 }
 0x287   :  { %2720 = vmatpush3.bf16.msra.mxu1 %v2920_v44  ;;  %2723 = vmatprep.mubr.bf16.mxu1 %v2905_v31 }
 0x288   :  { %2721 = vmatprep.subr.bf16.mxu1 %v2921_v46 }
 0x28b   :  { %2722 = vmatpush3.bf16.msra.mxu1 %v2921_v46 }
 0x28c   :  { %2771 = vmatprep.subr.bf16.mxu1 %v2954_v17 }
 0x28e   :  { %2724 = vmatmul.mubr.bf16.vlgmr.msra.gmra.mxu1 %v2904_v30 }
 0x28f   :  { %2727 = vmatprep.mubr.bf16.mxu1 %v2903_v29  ;;  %2772 = vmatpush3.bf16.msra.mxu1 %v2954_v17 }
 0x290   :  { %2773 = vmatprep.subr.bf16.mxu1 %v2955_v18 }
 0x293   :  { %2774 = vmatpush3.bf16.msra.mxu1 %v2955_v18 }
 0x294   :  { %2775 = vmatprep.subr.bf16.mxu1 %v2956_v20 }
 0x296   :  { %2728 = vmatmul.mubr.bf16.gmra.mxu1 %v2902_v28 }
 0x297   :  { %2731 = vmatprep.mubr.bf16.mxu1 %v2901_v3  ;;  %2776 = vmatpush3.bf16.msra.mxu1 %v2956_v20  ;;  %v2958_v3 = vld [vmem:[#allocation19 + $0x18] sm:$0xff]  }
 0x298   :  { %2777 = vmatprep.subr.bf16.mxu1 %v2957_v22 }
 0x29b   :  { %2778 = vmatpush3.bf16.msra.mxu1 %v2957_v22 }
 0x29c   :  { %2779 = vmatprep.subr.bf16.mxu1 %v2958_v3 }
 0x29e   :  { %2732 = vmatmul.mubr.bf16.gmra.mxu1 %v2900_v27 }
 0x29f   :  { %2735 = vmatprep.mubr.bf16.mxu1 %v3400_v26  ;;  %v3410_v26 = vld [vmem:[%s3498_s8] ss:$0 sm:$0xff]  ;;  %2780 = vmatpush3.bf16.msra.mxu1 %v2958_v3 }
 0x2a0   :  { %2781 = vmatprep.subr.bf16.mxu1 %v2959_v34 }
 0x2a3   :  { %2782 = vmatpush3.bf16.msra.mxu1 %v2959_v34 }
 0x2a6   :  { %2736 = vmatmul.mubr.bf16.gmra.mxu1 %v3397_v25 }
 0x32e   :  { %v2661_v49 = vpop.f32.mrf.mxu1 }
 0x330   :  { %v1018_v50 = vpop.f32.mrf.mxu1 }
 0x332   :  { %v2662_v51 = vpop.f32.mrf.mxu1 }
 0x333   :  { %v1098_v54 = vpack.c.bf16 %v2662_v51, %v2661_v49 }
 0x334   :  { %v1021_v52 = vpop.f32.mrf.mxu1 }
 0x335   :  { %v1097_v53 = vpack.c.bf16 %v1021_v52, %v1018_v50 }
 0x336   :  { %v2665_v55 = vpop.f32.mrf.mxu1 }
 0x337   :  { %2691 = vmatprep.mubr.bf16.mxu0 %v1097_v53 }
 0x338   :  { %v1034_v56 = vpop.f32.mrf.mxu1  ;;  %2692 = vmatmul.mubr.bf16.vlgmr.msra.gmra.mxu0 %v1098_v54 }
 0x33a   :  { %v2666_v57 = vpop.f32.mrf.mxu1 }
 0x33b   :  { %v1100_v60 = vpack.c.bf16 %v2666_v57, %v2665_v55 }
 0x33c   :  { %v1037_v58 = vpop.f32.mrf.mxu1 }
 0x33d   :  { %v1099_v59 = vpack.c.bf16 %v1037_v58, %v1034_v56 }
 0x33e   :  { %v2669_v61 = vpop.f32.mrf.mxu1 }
 0x33f   :  { %2695 = vmatprep.mubr.bf16.mxu0 %v1099_v59 }
 0x340   :  { %v1050_v62 = vpop.f32.mrf.mxu1  ;;  %2696 = vmatmul.mubr.bf16.gmra.mxu0 %v1100_v60 }
 0x342   :  { %v2670_v63 = vpop.f32.mrf.mxu1 }
 0x343   :  { %v1102_v2 = vpack.c.bf16 %v2670_v63, %v2669_v61 }
 0x344   :  { %v1053_v0 = vpop.f32.mrf.mxu1 }
 0x345   :  { %v1101_v1 = vpack.c.bf16 %v1053_v0, %v1050_v62 }
 0x346   :  { %v2673_v4 = vpop.f32.mrf.mxu1 }
 0x347   :  { %2699 = vmatprep.mubr.bf16.mxu0 %v1101_v1 }
 0x348   :  { %v1066_v5 = vpop.f32.mrf.mxu1  ;;  %2700 = vmatmul.mubr.bf16.gmra.mxu0 %v1102_v2 }
 0x34a   :  { %v2674_v6 = vpop.f32.mrf.mxu1 }
 0x34b   :  { %v1104_v9 = vpack.c.bf16 %v2674_v6, %v2673_v4 }
 0x34c   :  { %v1069_v7 = vpop.f32.mrf.mxu1 }
 0x34d   :  { %v1103_v8 = vpack.c.bf16 %v1069_v7, %v1066_v5 }
 0x34e   :  { %v2725_v11 = vpop.f32.mrf.mxu1 }
 0x34f   :  { %2703 = vmatprep.mubr.bf16.mxu0 %v1103_v8 }
 0x350   :  { %2704 = vmatmul.mubr.bf16.gmra.mxu0 %v1104_v9  ;;  %v1348_v12 = vpop.f32.mrf.mxu1 }
 0x351   :  { %2755 = vmatprep.mubr.bf16.mxu0 %v2938_v10 }
 0x352   :  { %v2726_v13 = vpop.f32.mrf.mxu1 }
 0x354   :  { %v1351_v14 = vpop.f32.mrf.mxu1 }
 0x356   :  { %v2729_v15 = vpop.f32.mrf.mxu1 }
 0x358   :  { %v1364_v16 = vpop.f32.mrf.mxu1 }
 0x35a   :  { %v2730_v19 = vpop.f32.mrf.mxu1 }
 0x35c   :  { %v1367_v21 = vpop.f32.mrf.mxu1 }
 0x35e   :  { %v2733_v25 = vpop.f32.mrf.mxu1 }
 0x360   :  { %v1380_v32 = vpop.f32.mrf.mxu1 }
 0x362   :  { %v2734_v43 = vpop.f32.mrf.mxu1 }
 0x364   :  { %v1383_v53 = vpop.f32.mrf.mxu1 }
 0x366   :  { %v2737_v63 = vpop.f32.mrf.mxu1 }
 0x368   :  { %v1396_v10 = vpop.f32.mrf.mxu1 }
 0x36a   :  { %v2738_v20 = vpop.f32.mrf.mxu1 }
 0x3f8   :  { %v2693_v23 = vpop.f32.mrf.mxu0 }
 0x3f9   :  { %v1357_v24 = vadd.f32 %v2725_v11, %v2693_v23 }
 0x3fa   :  { %v1203_v27 = vpop.f32.mrf.mxu0 }
 0x3fb   :  { %v1349_v28 = vadd.f32 %v1348_v12, %v1203_v27  ;;  %v1420_v30 = vadd.f32 %v3410_v26, %v1357_v24 }
 0x3fc   :  { %v2694_v29 = vpop.f32.mrf.mxu0 }
 0x3fd   :  { %v1360_v31 = vadd.f32 %v2726_v13, %v2694_v29  ;;  %v1418_v35 = vadd.f32 %v3410_v26, %v1349_v28  ;;  %v1436_v39 = vmax.f32 %v1420_v30, 0.0  ;;  %v1399_v30 = vpop.f32.mrf.mxu1 }
 0x3fe   :  { %v1206_v33 = vpop.f32.mrf.mxu0 }
 0x3ff   :  { %v1421_v36 = vadd.f32 %v3410_v26, %v1360_v31  ;;  %v1352_v37 = vadd.f32 %v1351_v14, %v1206_v33  ;;  %v1434_v45 = vmax.f32 %v1418_v35, 0.0 }
 0x400   :  { %v2697_v38 = vpop.f32.mrf.mxu0 }
 0x401   :  { %v1437_v40 = vmax.f32 %v1421_v36, 0.0  ;;  %v1419_v41 = vadd.f32 %v3410_v26, %v1352_v37  ;;  %v1373_v42 = vadd.f32 %v2729_v15, %v2697_v38 }
 0x402   :  { %v1219_v44 = vpop.f32.mrf.mxu0 }
 0x403   :  { %v2357_v46 = vpack.c.bf16 %v1437_v40, %v1436_v39  ;;  %v1435_v47 = vmax.f32 %v1419_v41, 0.0  ;;  %v1365_v48 = vadd.f32 %v1364_v16, %v1219_v44  ;;  %v1424_v51 = vadd.f32 %v3410_v26, %v1373_v42 }
 0x404   :  { %v2698_v49 = vpop.f32.mrf.mxu0 }
 0x405   :  { %2396 = vst [vmem:[#allocation3 + $0x8] sm:$0xff] %v2357_v46   ;;  %v2352_v50 = vpack.c.bf16 %v1435_v47, %v1434_v45  ;;  %v1376_v52 = vadd.f32 %v2730_v19, %v2698_v49  ;;  %v1422_v55 = vadd.f32 %v3410_v26, %v1365_v48  ;;  %v1440_v59 = vmax.f32 %v1424_v51, 0.0  ;;  %v2940_v49 = vld [vmem:[#allocation18 + $0x38] sm:$0xff]   ;;  %v2942_v51 = vld [vmem:[#allocation16 + $0x10] sm:$0xff]  }
 0x406   :  { %v1222_v54 = vpop.f32.mrf.mxu0 }
 0x407   :  { %2353 = vst [vmem:[#allocation3] sm:$0xff] %v2352_v50   ;;  %v1425_v56 = vadd.f32 %v3410_v26, %v1376_v52  ;;  %v1368_v57 = vadd.f32 %v1367_v21, %v1222_v54  ;;  %v1438_v1 = vmax.f32 %v1422_v55, 0.0  ;;  %v2939_v50 = vld [vmem:[#allocation16 + $0x8] sm:$0xff]   ;;  %v2941_v52 = vld [vmem:[#allocation18 + $0x30] sm:$0xff]   ;;  %v2943_v54 = vld [vmem:[#allocation16 + $0x18] sm:$0xff]  }
 0x408   :  { %v2701_v58 = vpop.f32.mrf.mxu0  ;;  %v2946_v55 = vld [vmem:[#allocation16 + $0x20] sm:$0xff]  }
 0x409   :  { %v1441_v60 = vmax.f32 %v1425_v56, 0.0  ;;  %v1423_v61 = vadd.f32 %v3410_v26, %v1368_v57  ;;  %v1389_v62 = vadd.f32 %v2733_v25, %v2701_v58  ;;  %v2945_v56 = vld [vmem:[#allocation18 + $0x20] sm:$0xff]   ;;  %v3444_v57 = vld [vmem:[#allocation18 + $0x18] sm:$0xff]   ;;  %v2947_v58 = vld [vmem:[#allocation16 + $0x28] sm:$0xff]  }
 0x40a   :  { %v1235_v0 = vpop.f32.mrf.mxu0 }
 0x40b   :  { %v2367_v2 = vpack.c.bf16 %v1441_v60, %v1440_v59  ;;  %v1439_v4 = vmax.f32 %v1423_v61, 0.0  ;;  %v1381_v5 = vadd.f32 %v1380_v32, %v1235_v0  ;;  %v1428_v8 = vadd.f32 %v3410_v26, %v1389_v62  ;;  %v2950_v59 = vld [vmem:[#allocation16 + $0x30] sm:$0xff]   ;;  %v3451_v61 = vld [vmem:[#allocation18 + $0x8] sm:$0xff]   ;;  %v2951_v62 = vld [vmem:[#allocation16 + $0x38] sm:$0xff]  }
 0x40c   :  { %v2702_v6 = vpop.f32.mrf.mxu0  ;;  %v2936_v47 = vld [vmem:[#allocation3 + $0x8] sm:$0xff]   ;;  %v3447_v60 = vld [vmem:[#allocation18 + $0x10] sm:$0xff]  }
 0x40d   :  { %2398 = vst [vmem:[#allocation3 + $0x18] sm:$0xff] %v2367_v2   ;;  %v2362_v7 = vpack.c.bf16 %v1439_v4, %v1438_v1  ;;  %v1392_v9 = vadd.f32 %v2734_v43, %v2702_v6  ;;  %v1426_v12 = vadd.f32 %v3410_v26, %v1381_v5  ;;  %v1444_v16 = vmax.f32 %v1428_v8, 0.0  ;;  %v2960_v0 = vld [vmem:[#allocation19 + $0x8] sm:$0xff]   ;;  %v2961_v1 = vld [vmem:[#allocation19] sm:$0xff]  }
 0x40e   :  { %v1238_v11 = vpop.f32.mrf.mxu0  ;;  %v2937_v48 = vld [vmem:[#allocation3] sm:$0xff]   ;;  %2783 = vmatprep.subr.bf16.mxu1 %v2960_v0 }
 0x40f   :  { %2397 = vst [vmem:[#allocation3 + $0x10] sm:$0xff] %v2362_v7   ;;  %v1429_v13 = vadd.f32 %v3410_v26, %v1392_v9  ;;  %v1384_v14 = vadd.f32 %v1383_v53, %v1238_v11  ;;  %v1442_v22 = vmax.f32 %v1426_v12, 0.0  ;;  %v2944_v53 = vld [vmem:[#allocation18 + $0x28] sm:$0xff]   ;;  %2784 = vmatpush3.bf16.msra.mxu1 %v2960_v0 }
 0x410   :  { %v2705_v15 = vpop.f32.mrf.mxu0  ;;  %2785 = vmatprep.subr.bf16.mxu1 %v2961_v1 }
 0x411   :  { %v1445_v17 = vmax.f32 %v1429_v13, 0.0  ;;  %v1427_v18 = vadd.f32 %v3410_v26, %v1384_v14  ;;  %v1405_v19 = vadd.f32 %v2737_v63, %v2705_v15  ;;  %v2953_v63 = vld [vmem:[#allocation18] sm:$0xff]  }
 0x412   :  { %v1251_v21 = vpop.f32.mrf.mxu0 }
 0x413   :  { %v2377_v23 = vpack.c.bf16 %v1445_v17, %v1444_v16  ;;  %v1443_v24 = vmax.f32 %v1427_v18, 0.0  ;;  %v1397_v25 = vadd.f32 %v1396_v10, %v1251_v21  ;;  %v1432_v28 = vadd.f32 %v3410_v26, %v1405_v19  ;;  %2786 = vmatpush3.bf16.msra.mxu1 %v2961_v1 }
 0x414   :  { %v2706_v27 = vpop.f32.mrf.mxu0  ;;  %v2934_v45 = vld [vmem:[#allocation3 + $0x18] sm:$0xff]   ;;  %2835 = vmatprep.subr.bf16.mxu1 %v2940_v49 }
 0x415   :  { %2400 = vst [vmem:[#allocation3 + $0x28] sm:$0xff] %v2377_v23   ;;  %v2372_v3 = vpack.c.bf16 %v1443_v24, %v1442_v22  ;;  %v1408_v29 = vadd.f32 %v2738_v20, %v2706_v27  ;;  %v1430_v32 = vadd.f32 %v3410_v26, %v1397_v25  ;;  %v1448_v35 = vmax.f32 %v1432_v28, 0.0 }
 0x416   :  { %v1254_v31 = vpop.f32.mrf.mxu0  ;;  %v2935_v46 = vld [vmem:[#allocation3 + $0x10] sm:$0xff]  }
 0x417   :  { %2399 = vst [vmem:[#allocation3 + $0x20] sm:$0xff] %v2372_v3   ;;  %v1433_v33 = vadd.f32 %v3410_v26, %v1408_v29  ;;  %v1400_v34 = vadd.f32 %v1399_v30, %v1254_v31  ;;  %v1446_v38 = vmax.f32 %v1430_v32, 0.0  ;;  %v3469_v32 = vld [vmem:[%s3502_s12] ss:$0 sm:$0xff]  ;;  %s3208_s12 = smov [#allocation21]  }
 0x418   :  { %s2129_s9 = sshll.u32 %s3208_s12, 4  ;;  %s2130_s9 = int_to_ptr.vmem [resolvable:$true] %s2129_s9 }
 0x419   :  { %v1449_v36 = vmax.f32 %v1433_v33, 0.0  ;;  %v1431_v37 = vadd.f32 %v3410_v26, %v1400_v34  ;;  %s3162_s19 = scalar_lea.vmem %s2130_s9, 2048  ;;  %p3167_p9 = scmp.lt.s32.totalorder %s2130_s9, %s2130_s9 }
 0x41a   :  { %p3163_p8 = scmp.ne.s32.totalorder %s2130_s9, %s3162_s19  ;;  %p3168_p10 = scmp.lt.s32.totalorder %s3162_s19, %s3162_s19 }
 0x41b   :  { %v2387_v39 = vpack.c.bf16 %v1449_v36, %v1448_v35  ;;  %v1447_v40 = vmax.f32 %v1431_v37, 0.0 }
 0x41c   :  { %v3435_v44 = vld [vmem:[#allocation3 + $0x28] sm:$0xff]   ;;  %p3169_p11 = por %p3168_p10, %p3167_p9 }
 0x41d   :  { %2402 = vst [vmem:[#allocation3 + $0x38] sm:$0xff] %v2387_v39   ;;  %v2382_v41 = vpack.c.bf16 %v1447_v40, %v1446_v38 }
 0x41e   :  { %v3439_v26 = vld [vmem:[#allocation3 + $0x20] sm:$0xff]   ;;  %p3170_p12 = pnand %p3169_p11, %p3163_p8 }
 0x41f   :  { %2401 = vst [vmem:[#allocation3 + $0x30] sm:$0xff] %v2382_v41  }
 0x424   :  { %v3428_v42 = vld [vmem:[#allocation3 + $0x38] sm:$0xff]  }
 0x425   :  { %2739 = vmatprep.subr.bf16.mxu0 %v3428_v42 }
 0x426   :  { %v3431_v43 = vld [vmem:[#allocation3 + $0x30] sm:$0xff]   ;;  %2740 = vmatpush3.bf16.msra.mxu0 %v3428_v42 }
 0x427   :  { %2741 = vmatprep.subr.bf16.mxu0 %v3431_v43 }
 0x42a   :  { %2742 = vmatpush3.bf16.msra.mxu0 %v3431_v43 }
 0x42b   :  { %2743 = vmatprep.subr.bf16.mxu0 %v3435_v44 }
 0x42e   :  { %2744 = vmatpush3.bf16.msra.mxu0 %v3435_v44 }
 0x42f   :  { %2745 = vmatprep.subr.bf16.mxu0 %v3439_v26 }
 0x432   :  { %2746 = vmatpush3.bf16.msra.mxu0 %v3439_v26 }
 0x433   :  { %2747 = vmatprep.subr.bf16.mxu0 %v2934_v45 }
 0x436   :  { %2748 = vmatpush3.bf16.msra.mxu0 %v2934_v45 }
 0x437   :  { %2749 = vmatprep.subr.bf16.mxu0 %v2935_v46 }
 0x43a   :  { %2750 = vmatpush3.bf16.msra.mxu0 %v2935_v46 }
 0x43b   :  { %2751 = vmatprep.subr.bf16.mxu0 %v2936_v47 }
 0x43e   :  { %2752 = vmatpush3.bf16.msra.mxu0 %v2936_v47 }
 0x43f   :  { %2753 = vmatprep.subr.bf16.mxu0 %v2937_v48 }
 0x442   :  { %2754 = vmatpush3.bf16.msra.mxu0 %v2937_v48 }
 0x443   :  { %2803 = vmatprep.subr.bf16.mxu0 %v2940_v49 }
 0x445   :  { %2756 = vmatmul.mubr.bf16.vlgmr.msra.gmra.mxu0 %v2939_v50 }
 0x446   :  { %2804 = vmatpush3.bf16.msra.mxu0 %v2940_v49  ;;  %2759 = vmatprep.mubr.bf16.mxu0 %v2942_v51 }
 0x447   :  { %2805 = vmatprep.subr.bf16.mxu0 %v2941_v52 }
 0x44a   :  { %2806 = vmatpush3.bf16.msra.mxu0 %v2941_v52 }
 0x44b   :  { %2807 = vmatprep.subr.bf16.mxu0 %v2944_v53 }
 0x44d   :  { %2760 = vmatmul.mubr.bf16.gmra.mxu0 %v2943_v54 }
 0x44e   :  { %2808 = vmatpush3.bf16.msra.mxu0 %v2944_v53  ;;  %2763 = vmatprep.mubr.bf16.mxu0 %v2946_v55 }
 0x44f   :  { %2809 = vmatprep.subr.bf16.mxu0 %v2945_v56 }
 0x452   :  { %2810 = vmatpush3.bf16.msra.mxu0 %v2945_v56 }
 0x453   :  { %2811 = vmatprep.subr.bf16.mxu0 %v3444_v57 }
 0x455   :  { %2764 = vmatmul.mubr.bf16.gmra.mxu0 %v2947_v58 }
 0x456   :  { %2812 = vmatpush3.bf16.msra.mxu0 %v3444_v57  ;;  %2767 = vmatprep.mubr.bf16.mxu0 %v2950_v59 }
 0x457   :  { %2813 = vmatprep.subr.bf16.mxu0 %v3447_v60 }
 0x45a   :  { %2814 = vmatpush3.bf16.msra.mxu0 %v3447_v60 }
 0x45b   :  { %2815 = vmatprep.subr.bf16.mxu0 %v3451_v61 }
 0x45d   :  { %2768 = vmatmul.mubr.bf16.gmra.mxu0 %v2951_v62 }
 0x45e   :  { %2816 = vmatpush3.bf16.msra.mxu0 %v3451_v61  ;;  %2819 = vmatprep.mubr.bf16.mxu0 %v2937_v48 }
 0x45f   :  { %2817 = vmatprep.subr.bf16.mxu0 %v2953_v63 }
 0x462   :  { %2818 = vmatpush3.bf16.msra.mxu0 %v2953_v63 }
 0x465   :  { %2820 = vmatmul.mubr.bf16.vlgmr.msra.gmra.mxu0 %v2936_v47 }
 0x466   :  { %2823 = vmatprep.mubr.bf16.mxu0 %v2935_v46 }
 0x46d   :  { %2824 = vmatmul.mubr.bf16.gmra.mxu0 %v2934_v45 }
 0x505   :  { %v2757_v2 = vpop.f32.mrf.mxu0 }
 0x507   :  { %v1692_v4 = vpop.f32.mrf.mxu0 }
 0x509   :  { %v2758_v5 = vpop.f32.mrf.mxu0 }
 0x50a   :  { %v1772_v8 = vpack.c.bf16 %v2758_v5, %v2757_v2 }
 0x50b   :  { %v1695_v6 = vpop.f32.mrf.mxu0 }
 0x50c   :  { %v1771_v7 = vpack.c.bf16 %v1695_v6, %v1692_v4 }
 0x50d   :  { %v2761_v9 = vpop.f32.mrf.mxu0 }
 0x50e   :  { %2787 = vmatprep.mubr.bf16.mxu1 %v1771_v7 }
 0x50f   :  { %v1708_v10 = vpop.f32.mrf.mxu0  ;;  %2788 = vmatmul.mubr.bf16.vlgmr.msra.gmra.mxu1 %v1772_v8 }
 0x510   :  { %2843 = vmatpush3.bf16.msra.mxu1 %v2940_v49 }
 0x511   :  { %v2762_v11 = vpop.f32.mrf.mxu0  ;;  %2836 = vmatprep.subr.bf16.mxu1 %v2941_v52 }
 0x512   :  { %v1774_v14 = vpack.c.bf16 %v2762_v11, %v2761_v9 }
 0x513   :  { %v1711_v12 = vpop.f32.mrf.mxu0 }
 0x514   :  { %v1773_v13 = vpack.c.bf16 %v1711_v12, %v1708_v10  ;;  %2844 = vmatpush3.bf16.msra.mxu1 %v2941_v52 }
 0x515   :  { %v2765_v15 = vpop.f32.mrf.mxu0  ;;  %2837 = vmatprep.subr.bf16.mxu1 %v2944_v53 }
 0x516   :  { %2791 = vmatprep.mubr.bf16.mxu1 %v1773_v13 }
 0x517   :  { %v1724_v16 = vpop.f32.mrf.mxu0  ;;  %2792 = vmatmul.mubr.bf16.gmra.mxu1 %v1774_v14 }
 0x518   :  { %2845 = vmatpush3.bf16.msra.mxu1 %v2944_v53 }
 0x519   :  { %v2766_v17 = vpop.f32.mrf.mxu0  ;;  %2838 = vmatprep.subr.bf16.mxu1 %v2945_v56 }
 0x51a   :  { %v1776_v20 = vpack.c.bf16 %v2766_v17, %v2765_v15 }
 0x51b   :  { %v1727_v18 = vpop.f32.mrf.mxu0 }
 0x51c   :  { %v1775_v19 = vpack.c.bf16 %v1727_v18, %v1724_v16  ;;  %2846 = vmatpush3.bf16.msra.mxu1 %v2945_v56 }
 0x51d   :  { %v2769_v21 = vpop.f32.mrf.mxu0  ;;  %2839 = vmatprep.subr.bf16.mxu1 %v3444_v57 }
 0x51e   :  { %2795 = vmatprep.mubr.bf16.mxu1 %v1775_v19 }
 0x51f   :  { %v1740_v22 = vpop.f32.mrf.mxu0  ;;  %2796 = vmatmul.mubr.bf16.gmra.mxu1 %v1776_v20 }
 0x520   :  { %2847 = vmatpush3.bf16.msra.mxu1 %v3444_v57 }
 0x521   :  { %v2770_v23 = vpop.f32.mrf.mxu0  ;;  %2840 = vmatprep.subr.bf16.mxu1 %v3447_v60 }
 0x522   :  { %v1778_v27 = vpack.c.bf16 %v2770_v23, %v2769_v21 }
 0x523   :  { %v1743_v24 = vpop.f32.mrf.mxu0 }
 0x524   :  { %v1777_v25 = vpack.c.bf16 %v1743_v24, %v1740_v22  ;;  %2848 = vmatpush3.bf16.msra.mxu1 %v3447_v60 }
 0x525   :  { %2841 = vmatprep.subr.bf16.mxu1 %v3451_v61  ;;  %v2821_v3 = vpop.f32.mrf.mxu0 }
 0x526   :  { %2799 = vmatprep.mubr.bf16.mxu1 %v1777_v25 }
 0x527   :  { %2800 = vmatmul.mubr.bf16.gmra.mxu1 %v1778_v27  ;;  %v2022_v28 = vpop.f32.mrf.mxu0 }
 0x528   :  { %2849 = vmatpush3.bf16.msra.mxu1 %v3451_v61  ;;  %2827 = vmatprep.mubr.bf16.mxu1 %v3439_v26 }
 0x529   :  { %2842 = vmatprep.subr.bf16.mxu1 %v2953_v63  ;;  %v2822_v29 = vpop.f32.mrf.mxu0 }
 0x52b   :  { %v2025_v30 = vpop.f32.mrf.mxu0 }
 0x52c   :  { %2850 = vmatpush3.bf16.msra.mxu1 %v2953_v63 }
 0x52d   :  { %v2825_v34 = vpop.f32.mrf.mxu0 }
 0x52f   :  { %2828 = vmatmul.mubr.bf16.vlgmr.msra.gmra.mxu1 %v3435_v44  ;;  %v2038_v41 = vpop.f32.mrf.mxu0 }
 0x530   :  { %2831 = vmatprep.mubr.bf16.mxu1 %v3431_v43 }
 0x531   :  { %v2826_v47 = vpop.f32.mrf.mxu0 }
 0x533   :  { %v2041_v54 = vpop.f32.mrf.mxu0 }
 0x537   :  { %2832 = vmatmul.mubr.bf16.gmra.mxu1 %v3428_v42 }
 0x5cf   :  { %v2789_v31 = vpop.f32.mrf.mxu1 }
 0x5d0   :  { %v2031_v33 = vadd.f32 %v2821_v3, %v2789_v31 }
 0x5d1   :  { %v1877_v35 = vpop.f32.mrf.mxu1 }
 0x5d2   :  { %v2094_v36 = vadd.f32 %v3469_v32, %v2031_v33  ;;  %v2023_v37 = vadd.f32 %v2022_v28, %v1877_v35 }
 0x5d3   :  { %v2790_v38 = vpop.f32.mrf.mxu1 }
 0x5d4   :  { %2110 = vst [vmem:[#allocation21 + $0x10] sm:$0xff] %v2094_v36  ;;  %v2092_v39 = vadd.f32 %v3469_v32, %v2023_v37  ;;  %v2034_v40 = vadd.f32 %v2822_v29, %v2790_v38 }
 0x5d5   :  { %v1880_v42 = vpop.f32.mrf.mxu1 }
 0x5d6   :  { %2108 = vst [vmem:[#allocation21] sm:$0xff] %v2092_v39  ;;  %v2095_v43 = vadd.f32 %v3469_v32, %v2034_v40  ;;  %v2026_v44 = vadd.f32 %v2025_v30, %v1880_v42 }
 0x5d7   :  { %v2793_v26 = vpop.f32.mrf.mxu1 }
 0x5d8   :  { %2111 = vst [vmem:[#allocation21 + $0x18] sm:$0xff] %v2095_v43  ;;  %v2093_v45 = vadd.f32 %v3469_v32, %v2026_v44  ;;  %v2047_v46 = vadd.f32 %v2825_v34, %v2793_v26 }
 0x5d9   :  { %v1893_v48 = vpop.f32.mrf.mxu1 }
 0x5da   :  { %2109 = vst [vmem:[#allocation21 + $0x8] sm:$0xff] %v2093_v45  ;;  %v2098_v49 = vadd.f32 %v3469_v32, %v2047_v46  ;;  %v2039_v50 = vadd.f32 %v2038_v41, %v1893_v48 }
 0x5db   :  { %v2794_v51 = vpop.f32.mrf.mxu1 }
 0x5dc   :  { %2114 = vst [vmem:[#allocation21 + $0x30] sm:$0xff] %v2098_v49  ;;  %v2096_v52 = vadd.f32 %v3469_v32, %v2039_v50  ;;  %v2050_v53 = vadd.f32 %v2826_v47, %v2794_v51 }
 0x5dd   :  { %v1896_v55 = vpop.f32.mrf.mxu1 }
 0x5de   :  { %2112 = vst [vmem:[#allocation21 + $0x20] sm:$0xff] %v2096_v52  ;;  %v2099_v56 = vadd.f32 %v3469_v32, %v2050_v53  ;;  %v2042_v57 = vadd.f32 %v2041_v54, %v1896_v55 }
 0x5df   :  { %v2797_v58 = vpop.f32.mrf.mxu1 }
 0x5e0   :  { %2115 = vst [vmem:[#allocation21 + $0x38] sm:$0xff] %v2099_v56  ;;  %v2097_v59 = vadd.f32 %v3469_v32, %v2042_v57 }
 0x5e1   :  { %v1909_v60 = vpop.f32.mrf.mxu1 }
 0x5e2   :  { %2113 = vst [vmem:[#allocation21 + $0x28] sm:$0xff] %v2097_v59 }
 0x5e3   :  { %v2798_v61 = vpop.f32.mrf.mxu1 }
 0x5e5   :  { %v1912_v62 = vpop.f32.mrf.mxu1 }
 0x5e7   :  { %v2801_v63 = vpop.f32.mrf.mxu1 }
 0x5e9   :  { %v1925_v0 = vpop.f32.mrf.mxu1 }
 0x5eb   :  { %v2802_v1 = vpop.f32.mrf.mxu1 }
 0x5ed   :  { %v1928_v2 = vpop.f32.mrf.mxu1 }
 0x5ef   :  { %v2829_v4 = vpop.f32.mrf.mxu1 }
 0x5f0   :  { %v2063_v5 = vadd.f32 %v2829_v4, %v2797_v58 }
 0x5f1   :  { %v2054_v6 = vpop.f32.mrf.mxu1 }
 0x5f2   :  { %v2102_v7 = vadd.f32 %v3469_v32, %v2063_v5  ;;  %v2055_v8 = vadd.f32 %v2054_v6, %v1909_v60 }
 0x5f3   :  { %v2830_v9 = vpop.f32.mrf.mxu1 }
 0x5f4   :  { %2118 = vst [vmem:[#allocation21 + $0x50] sm:$0xff] %v2102_v7  ;;  %v2100_v10 = vadd.f32 %v3469_v32, %v2055_v8  ;;  %v2066_v11 = vadd.f32 %v2830_v9, %v2798_v61 }
 0x5f5   :  { %v2057_v12 = vpop.f32.mrf.mxu1 }
 0x5f6   :  { %2116 = vst [vmem:[#allocation21 + $0x40] sm:$0xff] %v2100_v10  ;;  %v2103_v13 = vadd.f32 %v3469_v32, %v2066_v11  ;;  %v2058_v14 = vadd.f32 %v2057_v12, %v1912_v62 }
 0x5f7   :  { %v2833_v15 = vpop.f32.mrf.mxu1 }
 0x5f8   :  { %2119 = vst [vmem:[#allocation21 + $0x58] sm:$0xff] %v2103_v13  ;;  %v2101_v16 = vadd.f32 %v3469_v32, %v2058_v14  ;;  %v2079_v17 = vadd.f32 %v2833_v15, %v2801_v63 }
 0x5f9   :  { %v2070_v18 = vpop.f32.mrf.mxu1 }
 0x5fa   :  { %2117 = vst [vmem:[#allocation21 + $0x48] sm:$0xff] %v2101_v16  ;;  %v2106_v19 = vadd.f32 %v3469_v32, %v2079_v17  ;;  %v2071_v20 = vadd.f32 %v2070_v18, %v1925_v0 }
 0x5fb   :  { %v2834_v21 = vpop.f32.mrf.mxu1 }
 0x5fc   :  { %2122 = vst [vmem:[#allocation21 + $0x70] sm:$0xff] %v2106_v19  ;;  %v2104_v22 = vadd.f32 %v3469_v32, %v2071_v20  ;;  %v2082_v23 = vadd.f32 %v2834_v21, %v2802_v1 }
 0x5fd   :  { %v2073_v24 = vpop.f32.mrf.mxu1 }
 0x5fe   :  { %2120 = vst [vmem:[#allocation21 + $0x60] sm:$0xff] %v2104_v22  ;;  %v2107_v25 = vadd.f32 %v3469_v32, %v2082_v23  ;;  %v2074_v27 = vadd.f32 %v2073_v24, %v1928_v2 }
 0x600   :  { %2123 = vst [vmem:[#allocation21 + $0x78] sm:$0xff] %v2107_v25  ;;  %v2105_v3 = vadd.f32 %v3469_v32, %v2074_v27 }
 0x602   :  { %2121 = vst [vmem:[#allocation21 + $0x68] sm:$0xff] %v2105_v3 }
 0x603   :  { %3173 = shalt.err (!%p3170_p12)
}
 0x604   :  { %s3209_s20 = smov 128   ;;  %s3210_s21 = smov 8  }
 0x605   :  { %2135 = dma.vmem_to_hbm [thread:$0]  %s2130_s9, 2048, %s3503_s13, [#allocation6], %s3209_s20, %s3209_s20, %s3210_s21  }
 0x606   :  { %3194 = dma.done.wait [#allocation6], 2048  }
 0x607   :  { %3195 = vsyncadd [#allocation6], 4294965248 }
 0x608   :  { %2139 = vsyncpa [#allocation5], 1 }
 0x609   :  { %2140 = vsyncpa [#allocation8], 1 }
 0x60a   :  { %2141 = vsyncpa [#allocation11], 1 }
 0x60b   :  { %2142 = vsyncpa [#allocation14], 1 }
 0x60c   :  { %2143 = vsyncpa [#allocation17], 1 }
 0x60d   :  { %2144 = vsyncpa [#allocation20], 1 }
 0x60e   :  { %2145 = vsyncpa [#allocation6], 1 }

</bundles_post_ra>
